<compile_context>
chip_gen: v5e
topology: v5e:2x2
jax: 0.10.0
libtpu: 0.0.40
codegen_flags: <defaults>
</compile_context>

<pallas_src>
import jax
import jax.numpy as jnp
import numpy as np
from jax.experimental import pallas as pl
from jax.experimental.pallas import tpu as pltpu

# ---------------------------------------------------------------------------
# Model dims (small, consistent with the module's forward)
# ---------------------------------------------------------------------------
VOCAB = 32
EMBED = 16
HIDDEN = 32
NUM_LAYERS = 2          # kernel below is written for exactly 2 GRU layers
BATCH = 2
SEQ = 8
IN0 = EMBED + HIDDEN    # input size of GRU layer 0 (embedding concat with context)


# ---------------------------------------------------------------------------
# Pallas kernel: whole recurrence in one invocation, unrolled time loop
# ---------------------------------------------------------------------------
def _gru_update(gi, gh, h):
    """PyTorch GRU cell semantics (gate order r, z, n); gi/gh already include biases."""
    H = HIDDEN
    r = jax.nn.sigmoid(gi[:, :H] + gh[:, :H])
    z = jax.nn.sigmoid(gi[:, H:2 * H] + gh[:, H:2 * H])
    n = jnp.tanh(gi[:, 2 * H:] + r * gh[:, 2 * H:])
    return (1.0 - z) * n + z * h


def decoder_kernel(x_ref, h0i_ref, h1i_ref,
                   wih0e_ref, wih0c_ref, whh0_ref, bih0_ref, bhh0_ref,
                   wih1_ref, whh1_ref, bih1_ref, bhh1_ref,
                   wfc_ref, bfc_ref,
                   y_ref, h0o_ref, h1o_ref):
    # ---- hoisted, batched layer-0 input-gate matmul over ALL time steps ----
    x_all = x_ref[...]                                        # (SEQ*BATCH, EMBED)
    gi0_all = jnp.dot(x_all, wih0e_ref[...],
                      preferred_element_type=jnp.float32)     # (SEQ*BATCH, 3H)

    # ---- time-invariant context contribution (context = initial top-layer hidden) ----
    ctx_gates = jnp.dot(h1i_ref[...], wih0c_ref[...],
                        preferred_element_type=jnp.float32) + bih0_ref[...]  # (BATCH, 3H)

    whh0 = whh0_ref[...]
    bhh0 = bhh0_ref[...]
    wih1 = wih1_ref[...]
    whh1 = whh1_ref[...]
    bih1 = bih1_ref[...]
    bhh1 = bhh1_ref[...]

    h0 = h0i_ref[...]                                         # (BATCH, HIDDEN)
    h1 = h1i_ref[...]                                         # (BATCH, HIDDEN)

    h1_steps = []
    for t in range(SEQ):                                      # SEQ=8, fully unrolled
        gi0 = gi0_all[t * BATCH:(t + 1) * BATCH, :] + ctx_gates
        gh0 = jnp.dot(h0, whh0, preferred_element_type=jnp.float32) + bhh0
        h0 = _gru_update(gi0, gh0, h0)

        gi1 = jnp.dot(h0, wih1, preferred_element_type=jnp.float32) + bih1
        gh1 = jnp.dot(h1, whh1, preferred_element_type=jnp.float32) + bhh1
        h1 = _gru_update(gi1, gh1, h1)
        h1_steps.append(h1)

    # ---- deferred FC: one matmul and one rectangular store for all time steps ----
    h1_all = jnp.concatenate(h1_steps, axis=0)                # (SEQ*BATCH, HIDDEN)
    y_all = jnp.dot(h1_all, wfc_ref[...],
                    preferred_element_type=jnp.float32) + bfc_ref[...]
    y_ref[...] = y_all                                        # (SEQ*BATCH, VOCAB)
    h0o_ref[...] = h0
    h1o_ref[...] = h1


def prepare_decoder_params(params):
    """Pre-transpose all weights to (in_features, out_features) and split w_ih0 into
    its embedding-facing and context-facing halves.  Runs once, outside the hot path."""
    (w_ih0, w_hh0, b_ih0, b_hh0,
     w_ih1, w_hh1, b_ih1, b_hh1,
     w_fc, b_fc) = params
    return (
        jnp.transpose(w_ih0[:, :EMBED]),    # (EMBED, 3H)
        jnp.transpose(w_ih0[:, EMBED:]),    # (HIDDEN, 3H)
        jnp.transpose(w_hh0),               # (HIDDEN, 3H)
        b_ih0, b_hh0,                       # (1, 3H)
        jnp.transpose(w_ih1),               # (HIDDEN, 3H)
        jnp.transpose(w_hh1),               # (HIDDEN, 3H)
        b_ih1, b_hh1,                       # (1, 3H)
        jnp.transpose(w_fc),                # (HIDDEN, VOCAB)
        b_fc,                               # (1, VOCAB)
    )


def decoder_pallas(x_flat, h0_init, h1_init, prepped):
    """x_flat: (SEQ*BATCH, EMBED) f32 in (seq, batch) row order;
       h0_init/h1_init: (BATCH, HIDDEN) f32 per GRU layer."""
    vmem = pl.BlockSpec(memory_space=pltpu.MemorySpace.VMEM)
    n_in = 3 + len(prepped)
    y_flat, h0_out, h1_out = pl.pallas_call(
        decoder_kernel,
        out_shape=(
            jax.ShapeDtypeStruct((SEQ * BATCH, VOCAB), jnp.float32),
            jax.ShapeDtypeStruct((BATCH, HIDDEN), jnp.float32),
            jax.ShapeDtypeStruct((BATCH, HIDDEN), jnp.float32),
        ),
        in_specs=[vmem] * n_in,
        out_specs=(vmem, vmem, vmem),
    )(x_flat, h0_init, h1_init, *prepped)
    return y_flat, h0_out, h1_out


# ---------------------------------------------------------------------------
# Full module forward (glue: embedding gather + layout; everything else in kernel)
# ---------------------------------------------------------------------------
@jax.jit
def seq2seq_decoder_forward(x_tokens, state, emb_table, prepped):
    # embedding lookup (gather kept in XLA glue; not a Pallas hot path)
    x_emb = jnp.take(emb_table, x_tokens, axis=0)              # (B, S, EMBED)
    # (B, S, E) -> (S, B, E) -> (S*B, E): time-major flat layout for the batched matmul
    x_flat = jnp.transpose(x_emb, (1, 0, 2)).reshape(SEQ * BATCH, EMBED)

    y_flat, h0_out, h1_out = decoder_pallas(x_flat, state[0], state[1], prepped)

    y = jnp.transpose(y_flat.reshape(SEQ, BATCH, VOCAB), (1, 0, 2))   # (B, S, VOCAB)
    h_out = jnp.stack([h0_out, h1_out], axis=0)                       # (L, B, H)
    return y, h_out


# ---------------------------------------------------------------------------
# Pure-JAX reference (for correctness check)
# ---------------------------------------------------------------------------
def reference_forward(x_tokens, state, emb_table, params):
    (w_ih0, w_hh0, b_ih0, b_hh0,
     w_ih1, w_hh1, b_ih1, b_hh1,
     w_fc, b_fc) = params
    x_emb = jnp.take(emb_table, x_tokens, axis=0)
    context = jnp.broadcast_to(state[-1][:, None, :], (BATCH, SEQ, HIDDEN))
    x_cat = jnp.concatenate([x_emb, context], axis=2)

    def cell(x, h, w_ih, w_hh, b_ih, b_hh):
        gi = x @ w_ih.T + b_ih
        gh = h @ w_hh.T + b_hh
        H = HIDDEN
        r = jax.nn.sigmoid(gi[:, :H] + gh[:, :H])
        z = jax.nn.sigmoid(gi[:, H:2 * H] + gh[:, H:2 * H])
        n = jnp.tanh(gi[:, 2 * H:] + r * gh[:, 2 * H:])
        return (1.0 - z) * n + z * h

    def step(carry, x_t):
        h0, h1 = carry
        h0 = cell(x_t, h0, w_ih0, w_hh0, b_ih0, b_hh0)
        h1 = cell(h0, h1, w_ih1, w_hh1, b_ih1, b_hh1)
        y = h1 @ w_fc.T + b_fc
        return (h0, h1), y

    (h0f, h1f), ys = jax.lax.scan(step, (state[0], state[1]),
                                  jnp.transpose(x_cat, (1, 0, 2)))
    return jnp.transpose(ys, (1, 0, 2)), jnp.stack([h0f, h1f], axis=0)


# ---------------------------------------------------------------------------
# Deterministic parameter init
# ---------------------------------------------------------------------------
def init_params(key):
    ks = jax.random.split(key, 12)
    s = 0.1
    emb_table = jax.random.normal(ks[0], (VOCAB, EMBED), jnp.float32) * s
    w_ih0 = jax.random.normal(ks[1], (3 * HIDDEN, IN0), jnp.float32) * s
    w_hh0 = jax.random.normal(ks[2], (3 * HIDDEN, HIDDEN), jnp.float32) * s
    b_ih0 = jax.random.normal(ks[3], (1, 3 * HIDDEN), jnp.float32) * s
    b_hh0 = jax.random.normal(ks[4], (1, 3 * HIDDEN), jnp.float32) * s
    w_ih1 = jax.random.normal(ks[5], (3 * HIDDEN, HIDDEN), jnp.float32) * s
    w_hh1 = jax.random.normal(ks[6], (3 * HIDDEN, HIDDEN), jnp.float32) * s
    b_ih1 = jax.random.normal(ks[7], (1, 3 * HIDDEN), jnp.float32) * s
    b_hh1 = jax.random.normal(ks[8], (1, 3 * HIDDEN), jnp.float32) * s
    w_fc = jax.random.normal(ks[9], (VOCAB, HIDDEN), jnp.float32) * s
    b_fc = jax.random.normal(ks[10], (1, VOCAB), jnp.float32) * s
    params = (w_ih0, w_hh0, b_ih0, b_hh0,
              w_ih1, w_hh1, b_ih1, b_hh1,
              w_fc, b_fc)
    return emb_table, params


if __name__ == "__main__":
    key = jax.random.PRNGKey(0)
    k_tok, k_state, k_param = jax.random.split(key, 3)

    x_tokens = jax.random.randint(k_tok, (BATCH, SEQ), 0, VOCAB, jnp.int32)
    # init_state(en_outputs) would return the encoder's final hidden state:
    state = jax.random.normal(k_state, (NUM_LAYERS, BATCH, HIDDEN), jnp.float32) * 0.1
    emb_table, params = init_params(k_param)

    # One-time param preparation (pre-transpose / split) outside the hot path.
    prepped = jax.tree_util.tree_map(jnp.asarray, prepare_decoder_params(params))

    y, h_out = seq2seq_decoder_forward(x_tokens, state, emb_table, prepped)
    jax.block_until_ready((y, h_out))

    y_ref, h_ref = reference_forward(x_tokens, state, emb_table, params)
    np.testing.assert_allclose(np.asarray(y), np.asarray(y_ref), rtol=1e-3, atol=1e-3)
    np.testing.assert_allclose(np.asarray(h_out), np.asarray(h_ref), rtol=1e-3, atol=1e-3)

    assert y.shape == (BATCH, SEQ, VOCAB)
    assert h_out.shape == (NUM_LAYERS, BATCH, HIDDEN)

    # TODO(synk): bf16 weight casts (v6e/v7x MXU lever) skipped to keep f32 semantics within 1e-3.
    print("KERNEL_OK")
</pallas_src>

<mosaic_0001>
module attributes {stable_mosaic.version = 11 : i64} {
  func.func @decoder_kernel(%arg0: memref<16x16xf32, #tpu.memory_space<vmem>>, %arg1: memref<2x32xf32, #tpu.memory_space<vmem>>, %arg2: memref<2x32xf32, #tpu.memory_space<vmem>>, %arg3: memref<16x96xf32, #tpu.memory_space<vmem>>, %arg4: memref<32x96xf32, #tpu.memory_space<vmem>>, %arg5: memref<32x96xf32, #tpu.memory_space<vmem>>, %arg6: memref<1x96xf32, #tpu.memory_space<vmem>>, %arg7: memref<1x96xf32, #tpu.memory_space<vmem>>, %arg8: memref<32x96xf32, #tpu.memory_space<vmem>>, %arg9: memref<32x96xf32, #tpu.memory_space<vmem>>, %arg10: memref<1x96xf32, #tpu.memory_space<vmem>>, %arg11: memref<1x96xf32, #tpu.memory_space<vmem>>, %arg12: memref<32x32xf32, #tpu.memory_space<vmem>>, %arg13: memref<1x32xf32, #tpu.memory_space<vmem>>, %arg14: memref<16x32xf32, #tpu.memory_space<vmem>>, %arg15: memref<2x32xf32, #tpu.memory_space<vmem>>, %arg16: memref<2x32xf32, #tpu.memory_space<vmem>>) attributes {dimension_semantics = [], scalar_prefetch = 0 : i64, scratch_operands = 0 : i64, tpu.core_type = #tpu.core_type<tc>} {
    %c0 = arith.constant 0 : index
    %c0_0 = arith.constant 0 : index
    %0 = vector.load %arg0[%c0, %c0_0] : memref<16x16xf32, #tpu.memory_space<vmem>>, vector<16x16xf32>
    %c0_1 = arith.constant 0 : index
    %c0_2 = arith.constant 0 : index
    %1 = vector.load %arg3[%c0_1, %c0_2] : memref<16x96xf32, #tpu.memory_space<vmem>>, vector<16x96xf32>
    %cst = arith.constant dense<0.000000e+00> : vector<16x96xf32>
    %2 = tpu.matmul %0, %1, %cst {dimension_numbers = #tpu.dot_dimension_numbers<[1], [0], [0], [1], [0, 0, 1, 1], [], []>} : vector<16x16xf32>, vector<16x96xf32>, vector<16x96xf32> -> vector<16x96xf32>
    %c0_3 = arith.constant 0 : index
    %c0_4 = arith.constant 0 : index
    %3 = vector.load %arg2[%c0_3, %c0_4] : memref<2x32xf32, #tpu.memory_space<vmem>>, vector<2x32xf32>
    %c0_5 = arith.constant 0 : index
    %c0_6 = arith.constant 0 : index
    %4 = vector.load %arg4[%c0_5, %c0_6] : memref<32x96xf32, #tpu.memory_space<vmem>>, vector<32x96xf32>
    %cst_7 = arith.constant dense<0.000000e+00> : vector<2x96xf32>
    %5 = tpu.matmul %3, %4, %cst_7 {dimension_numbers = #tpu.dot_dimension_numbers<[1], [0], [0], [1], [0, 0, 1, 1], [], []>} : vector<2x32xf32>, vector<32x96xf32>, vector<2x96xf32> -> vector<2x96xf32>
    %c0_8 = arith.constant 0 : index
    %c0_9 = arith.constant 0 : index
    %6 = vector.load %arg6[%c0_8, %c0_9] : memref<1x96xf32, #tpu.memory_space<vmem>>, vector<1x96xf32>
    %7 = vector.broadcast %6 : vector<1x96xf32> to vector<2x96xf32>
    %8 = arith.addf %5, %7 : vector<2x96xf32>
    %c0_10 = arith.constant 0 : index
    %c0_11 = arith.constant 0 : index
    %9 = vector.load %arg5[%c0_10, %c0_11] : memref<32x96xf32, #tpu.memory_space<vmem>>, vector<32x96xf32>
    %c0_12 = arith.constant 0 : index
    %c0_13 = arith.constant 0 : index
    %10 = vector.load %arg7[%c0_12, %c0_13] : memref<1x96xf32, #tpu.memory_space<vmem>>, vector<1x96xf32>
    %c0_14 = arith.constant 0 : index
    %c0_15 = arith.constant 0 : index
    %11 = vector.load %arg8[%c0_14, %c0_15] : memref<32x96xf32, #tpu.memory_space<vmem>>, vector<32x96xf32>
    %c0_16 = arith.constant 0 : index
    %c0_17 = arith.constant 0 : index
    %12 = vector.load %arg9[%c0_16, %c0_17] : memref<32x96xf32, #tpu.memory_space<vmem>>, vector<32x96xf32>
    %c0_18 = arith.constant 0 : index
    %c0_19 = arith.constant 0 : index
    %13 = vector.load %arg10[%c0_18, %c0_19] : memref<1x96xf32, #tpu.memory_space<vmem>>, vector<1x96xf32>
    %c0_20 = arith.constant 0 : index
    %c0_21 = arith.constant 0 : index
    %14 = vector.load %arg11[%c0_20, %c0_21] : memref<1x96xf32, #tpu.memory_space<vmem>>, vector<1x96xf32>
    %c0_22 = arith.constant 0 : index
    %c0_23 = arith.constant 0 : index
    %15 = vector.load %arg1[%c0_22, %c0_23] : memref<2x32xf32, #tpu.memory_space<vmem>>, vector<2x32xf32>
    %c0_24 = arith.constant 0 : index
    %c0_25 = arith.constant 0 : index
    %16 = vector.load %arg2[%c0_24, %c0_25] : memref<2x32xf32, #tpu.memory_space<vmem>>, vector<2x32xf32>
    %17 = vector.extract_strided_slice %2 {offsets = [0, 0], sizes = [2, 96], strides = [1, 1]} : vector<16x96xf32> to vector<2x96xf32>
    %18 = arith.addf %17, %8 : vector<2x96xf32>
    %cst_26 = arith.constant dense<0.000000e+00> : vector<2x96xf32>
    %19 = tpu.matmul %15, %9, %cst_26 {dimension_numbers = #tpu.dot_dimension_numbers<[1], [0], [0], [1], [0, 0, 1, 1], [], []>} : vector<2x32xf32>, vector<32x96xf32>, vector<2x96xf32> -> vector<2x96xf32>
    %20 = vector.broadcast %10 : vector<1x96xf32> to vector<2x96xf32>
    %21 = arith.addf %19, %20 : vector<2x96xf32>
    %22 = vector.extract_strided_slice %18 {offsets = [0, 0], sizes = [2, 32], strides = [1, 1]} : vector<2x96xf32> to vector<2x32xf32>
    %23 = vector.extract_strided_slice %21 {offsets = [0, 0], sizes = [2, 32], strides = [1, 1]} : vector<2x96xf32> to vector<2x32xf32>
    %24 = arith.addf %22, %23 : vector<2x32xf32>
    %25 = arith.negf %24 : vector<2x32xf32>
    %26 = math.exp %25 : vector<2x32xf32>
    %cst_27 = arith.constant 1.000000e+00 : f32
    %27 = vector.broadcast %cst_27 : f32 to vector<2x32xf32>
    %28 = arith.addf %27, %26 : vector<2x32xf32>
    %29 = arith.divf %27, %28 : vector<2x32xf32>
    %30 = vector.extract_strided_slice %18 {offsets = [0, 32], sizes = [2, 32], strides = [1, 1]} : vector<2x96xf32> to vector<2x32xf32>
    %31 = vector.extract_strided_slice %21 {offsets = [0, 32], sizes = [2, 32], strides = [1, 1]} : vector<2x96xf32> to vector<2x32xf32>
    %32 = arith.addf %30, %31 : vector<2x32xf32>
    %33 = arith.negf %32 : vector<2x32xf32>
    %34 = math.exp %33 : vector<2x32xf32>
    %cst_28 = arith.constant 1.000000e+00 : f32
    %35 = vector.broadcast %cst_28 : f32 to vector<2x32xf32>
    %36 = arith.addf %35, %34 : vector<2x32xf32>
    %37 = arith.divf %35, %36 : vector<2x32xf32>
    %38 = vector.extract_strided_slice %18 {offsets = [0, 64], sizes = [2, 32], strides = [1, 1]} : vector<2x96xf32> to vector<2x32xf32>
    %39 = vector.extract_strided_slice %21 {offsets = [0, 64], sizes = [2, 32], strides = [1, 1]} : vector<2x96xf32> to vector<2x32xf32>
    %40 = arith.mulf %29, %39 : vector<2x32xf32>
    %41 = arith.addf %38, %40 : vector<2x32xf32>
    %42 = math.tanh %41 : vector<2x32xf32>
    %cst_29 = arith.constant 1.000000e+00 : f32
    %43 = vector.broadcast %cst_29 : f32 to vector<2x32xf32>
    %44 = arith.subf %43, %37 : vector<2x32xf32>
    %45 = arith.mulf %44, %42 : vector<2x32xf32>
    %46 = arith.mulf %37, %15 : vector<2x32xf32>
    %47 = arith.addf %45, %46 : vector<2x32xf32>
    %cst_30 = arith.constant dense<0.000000e+00> : vector<2x96xf32>
    %48 = tpu.matmul %47, %11, %cst_30 {dimension_numbers = #tpu.dot_dimension_numbers<[1], [0], [0], [1], [0, 0, 1, 1], [], []>} : vector<2x32xf32>, vector<32x96xf32>, vector<2x96xf32> -> vector<2x96xf32>
    %49 = vector.broadcast %13 : vector<1x96xf32> to vector<2x96xf32>
    %50 = arith.addf %48, %49 : vector<2x96xf32>
    %cst_31 = arith.constant dense<0.000000e+00> : vector<2x96xf32>
    %51 = tpu.matmul %16, %12, %cst_31 {dimension_numbers = #tpu.dot_dimension_numbers<[1], [0], [0], [1], [0, 0, 1, 1], [], []>} : vector<2x32xf32>, vector<32x96xf32>, vector<2x96xf32> -> vector<2x96xf32>
    %52 = vector.broadcast %14 : vector<1x96xf32> to vector<2x96xf32>
    %53 = arith.addf %51, %52 : vector<2x96xf32>
    %54 = vector.extract_strided_slice %50 {offsets = [0, 0], sizes = [2, 32], strides = [1, 1]} : vector<2x96xf32> to vector<2x32xf32>
    %55 = vector.extract_strided_slice %53 {offsets = [0, 0], sizes = [2, 32], strides = [1, 1]} : vector<2x96xf32> to vector<2x32xf32>
    %56 = arith.addf %54, %55 : vector<2x32xf32>
    %57 = arith.negf %56 : vector<2x32xf32>
    %58 = math.exp %57 : vector<2x32xf32>
    %cst_32 = arith.constant 1.000000e+00 : f32
    %59 = vector.broadcast %cst_32 : f32 to vector<2x32xf32>
    %60 = arith.addf %59, %58 : vector<2x32xf32>
    %61 = arith.divf %59, %60 : vector<2x32xf32>
    %62 = vector.extract_strided_slice %50 {offsets = [0, 32], sizes = [2, 32], strides = [1, 1]} : vector<2x96xf32> to vector<2x32xf32>
    %63 = vector.extract_strided_slice %53 {offsets = [0, 32], sizes = [2, 32], strides = [1, 1]} : vector<2x96xf32> to vector<2x32xf32>
    %64 = arith.addf %62, %63 : vector<2x32xf32>
    %65 = arith.negf %64 : vector<2x32xf32>
    %66 = math.exp %65 : vector<2x32xf32>
    %cst_33 = arith.constant 1.000000e+00 : f32
    %67 = vector.broadcast %cst_33 : f32 to vector<2x32xf32>
    %68 = arith.addf %67, %66 : vector<2x32xf32>
    %69 = arith.divf %67, %68 : vector<2x32xf32>
    %70 = vector.extract_strided_slice %50 {offsets = [0, 64], sizes = [2, 32], strides = [1, 1]} : vector<2x96xf32> to vector<2x32xf32>
    %71 = vector.extract_strided_slice %53 {offsets = [0, 64], sizes = [2, 32], strides = [1, 1]} : vector<2x96xf32> to vector<2x32xf32>
    %72 = arith.mulf %61, %71 : vector<2x32xf32>
    %73 = arith.addf %70, %72 : vector<2x32xf32>
    %74 = math.tanh %73 : vector<2x32xf32>
    %cst_34 = arith.constant 1.000000e+00 : f32
    %75 = vector.broadcast %cst_34 : f32 to vector<2x32xf32>
    %76 = arith.subf %75, %69 : vector<2x32xf32>
    %77 = arith.mulf %76, %74 : vector<2x32xf32>
    %78 = arith.mulf %69, %16 : vector<2x32xf32>
    %79 = arith.addf %77, %78 : vector<2x32xf32>
    %80 = vector.extract_strided_slice %2 {offsets = [2, 0], sizes = [2, 96], strides = [1, 1]} : vector<16x96xf32> to vector<2x96xf32>
    %81 = arith.addf %80, %8 : vector<2x96xf32>
    %cst_35 = arith.constant dense<0.000000e+00> : vector<2x96xf32>
    %82 = tpu.matmul %47, %9, %cst_35 {dimension_numbers = #tpu.dot_dimension_numbers<[1], [0], [0], [1], [0, 0, 1, 1], [], []>} : vector<2x32xf32>, vector<32x96xf32>, vector<2x96xf32> -> vector<2x96xf32>
    %83 = vector.broadcast %10 : vector<1x96xf32> to vector<2x96xf32>
    %84 = arith.addf %82, %83 : vector<2x96xf32>
    %85 = vector.extract_strided_slice %81 {offsets = [0, 0], sizes = [2, 32], strides = [1, 1]} : vector<2x96xf32> to vector<2x32xf32>
    %86 = vector.extract_strided_slice %84 {offsets = [0, 0], sizes = [2, 32], strides = [1, 1]} : vector<2x96xf32> to vector<2x32xf32>
    %87 = arith.addf %85, %86 : vector<2x32xf32>
    %88 = arith.negf %87 : vector<2x32xf32>
    %89 = math.exp %88 : vector<2x32xf32>
    %cst_36 = arith.constant 1.000000e+00 : f32
    %90 = vector.broadcast %cst_36 : f32 to vector<2x32xf32>
    %91 = arith.addf %90, %89 : vector<2x32xf32>
    %92 = arith.divf %90, %91 : vector<2x32xf32>
    %93 = vector.extract_strided_slice %81 {offsets = [0, 32], sizes = [2, 32], strides = [1, 1]} : vector<2x96xf32> to vector<2x32xf32>
    %94 = vector.extract_strided_slice %84 {offsets = [0, 32], sizes = [2, 32], strides = [1, 1]} : vector<2x96xf32> to vector<2x32xf32>
    %95 = arith.addf %93, %94 : vector<2x32xf32>
    %96 = arith.negf %95 : vector<2x32xf32>
    %97 = math.exp %96 : vector<2x32xf32>
    %cst_37 = arith.constant 1.000000e+00 : f32
    %98 = vector.broadcast %cst_37 : f32 to vector<2x32xf32>
    %99 = arith.addf %98, %97 : vector<2x32xf32>
    %100 = arith.divf %98, %99 : vector<2x32xf32>
    %101 = vector.extract_strided_slice %81 {offsets = [0, 64], sizes = [2, 32], strides = [1, 1]} : vector<2x96xf32> to vector<2x32xf32>
    %102 = vector.extract_strided_slice %84 {offsets = [0, 64], sizes = [2, 32], strides = [1, 1]} : vector<2x96xf32> to vector<2x32xf32>
    %103 = arith.mulf %92, %102 : vector<2x32xf32>
    %104 = arith.addf %101, %103 : vector<2x32xf32>
    %105 = math.tanh %104 : vector<2x32xf32>
    %cst_38 = arith.constant 1.000000e+00 : f32
    %106 = vector.broadcast %cst_38 : f32 to vector<2x32xf32>
    %107 = arith.subf %106, %100 : vector<2x32xf32>
    %108 = arith.mulf %107, %105 : vector<2x32xf32>
    %109 = arith.mulf %100, %47 : vector<2x32xf32>
    %110 = arith.addf %108, %109 : vector<2x32xf32>
    %cst_39 = arith.constant dense<0.000000e+00> : vector<2x96xf32>
    %111 = tpu.matmul %110, %11, %cst_39 {dimension_numbers = #tpu.dot_dimension_numbers<[1], [0], [0], [1], [0, 0, 1, 1], [], []>} : vector<2x32xf32>, vector<32x96xf32>, vector<2x96xf32> -> vector<2x96xf32>
    %112 = vector.broadcast %13 : vector<1x96xf32> to vector<2x96xf32>
    %113 = arith.addf %111, %112 : vector<2x96xf32>
    %cst_40 = arith.constant dense<0.000000e+00> : vector<2x96xf32>
    %114 = tpu.matmul %79, %12, %cst_40 {dimension_numbers = #tpu.dot_dimension_numbers<[1], [0], [0], [1], [0, 0, 1, 1], [], []>} : vector<2x32xf32>, vector<32x96xf32>, vector<2x96xf32> -> vector<2x96xf32>
    %115 = vector.broadcast %14 : vector<1x96xf32> to vector<2x96xf32>
    %116 = arith.addf %114, %115 : vector<2x96xf32>
    %117 = vector.extract_strided_slice %113 {offsets = [0, 0], sizes = [2, 32], strides = [1, 1]} : vector<2x96xf32> to vector<2x32xf32>
    %118 = vector.extract_strided_slice %116 {offsets = [0, 0], sizes = [2, 32], strides = [1, 1]} : vector<2x96xf32> to vector<2x32xf32>
    %119 = arith.addf %117, %118 : vector<2x32xf32>
    %120 = arith.negf %119 : vector<2x32xf32>
    %121 = math.exp %120 : vector<2x32xf32>
    %cst_41 = arith.constant 1.000000e+00 : f32
    %122 = vector.broadcast %cst_41 : f32 to vector<2x32xf32>
    %123 = arith.addf %122, %121 : vector<2x32xf32>
    %124 = arith.divf %122, %123 : vector<2x32xf32>
    %125 = vector.extract_strided_slice %113 {offsets = [0, 32], sizes = [2, 32], strides = [1, 1]} : vector<2x96xf32> to vector<2x32xf32>
    %126 = vector.extract_strided_slice %116 {offsets = [0, 32], sizes = [2, 32], strides = [1, 1]} : vector<2x96xf32> to vector<2x32xf32>
    %127 = arith.addf %125, %126 : vector<2x32xf32>
    %128 = arith.negf %127 : vector<2x32xf32>
    %129 = math.exp %128 : vector<2x32xf32>
    %cst_42 = arith.constant 1.000000e+00 : f32
    %130 = vector.broadcast %cst_42 : f32 to vector<2x32xf32>
    %131 = arith.addf %130, %129 : vector<2x32xf32>
    %132 = arith.divf %130, %131 : vector<2x32xf32>
    %133 = vector.extract_strided_slice %113 {offsets = [0, 64], sizes = [2, 32], strides = [1, 1]} : vector<2x96xf32> to vector<2x32xf32>
    %134 = vector.extract_strided_slice %116 {offsets = [0, 64], sizes = [2, 32], strides = [1, 1]} : vector<2x96xf32> to vector<2x32xf32>
    %135 = arith.mulf %124, %134 : vector<2x32xf32>
    %136 = arith.addf %133, %135 : vector<2x32xf32>
    %137 = math.tanh %136 : vector<2x32xf32>
    %cst_43 = arith.constant 1.000000e+00 : f32
    %138 = vector.broadcast %cst_43 : f32 to vector<2x32xf32>
    %139 = arith.subf %138, %132 : vector<2x32xf32>
    %140 = arith.mulf %139, %137 : vector<2x32xf32>
    %141 = arith.mulf %132, %79 : vector<2x32xf32>
    %142 = arith.addf %140, %141 : vector<2x32xf32>
    %143 = vector.extract_strided_slice %2 {offsets = [4, 0], sizes = [2, 96], strides = [1, 1]} : vector<16x96xf32> to vector<2x96xf32>
    %144 = arith.addf %143, %8 : vector<2x96xf32>
    %cst_44 = arith.constant dense<0.000000e+00> : vector<2x96xf32>
    %145 = tpu.matmul %110, %9, %cst_44 {dimension_numbers = #tpu.dot_dimension_numbers<[1], [0], [0], [1], [0, 0, 1, 1], [], []>} : vector<2x32xf32>, vector<32x96xf32>, vector<2x96xf32> -> vector<2x96xf32>
    %146 = vector.broadcast %10 : vector<1x96xf32> to vector<2x96xf32>
    %147 = arith.addf %145, %146 : vector<2x96xf32>
    %148 = vector.extract_strided_slice %144 {offsets = [0, 0], sizes = [2, 32], strides = [1, 1]} : vector<2x96xf32> to vector<2x32xf32>
    %149 = vector.extract_strided_slice %147 {offsets = [0, 0], sizes = [2, 32], strides = [1, 1]} : vector<2x96xf32> to vector<2x32xf32>
    %150 = arith.addf %148, %149 : vector<2x32xf32>
    %151 = arith.negf %150 : vector<2x32xf32>
    %152 = math.exp %151 : vector<2x32xf32>
    %cst_45 = arith.constant 1.000000e+00 : f32
    %153 = vector.broadcast %cst_45 : f32 to vector<2x32xf32>
    %154 = arith.addf %153, %152 : vector<2x32xf32>
    %155 = arith.divf %153, %154 : vector<2x32xf32>
    %156 = vector.extract_strided_slice %144 {offsets = [0, 32], sizes = [2, 32], strides = [1, 1]} : vector<2x96xf32> to vector<2x32xf32>
    %157 = vector.extract_strided_slice %147 {offsets = [0, 32], sizes = [2, 32], strides = [1, 1]} : vector<2x96xf32> to vector<2x32xf32>
    %158 = arith.addf %156, %157 : vector<2x32xf32>
    %159 = arith.negf %158 : vector<2x32xf32>
    %160 = math.exp %159 : vector<2x32xf32>
    %cst_46 = arith.constant 1.000000e+00 : f32
    %161 = vector.broadcast %cst_46 : f32 to vector<2x32xf32>
    %162 = arith.addf %161, %160 : vector<2x32xf32>
    %163 = arith.divf %161, %162 : vector<2x32xf32>
    %164 = vector.extract_strided_slice %144 {offsets = [0, 64], sizes = [2, 32], strides = [1, 1]} : vector<2x96xf32> to vector<2x32xf32>
    %165 = vector.extract_strided_slice %147 {offsets = [0, 64], sizes = [2, 32], strides = [1, 1]} : vector<2x96xf32> to vector<2x32xf32>
    %166 = arith.mulf %155, %165 : vector<2x32xf32>
    %167 = arith.addf %164, %166 : vector<2x32xf32>
    %168 = math.tanh %167 : vector<2x32xf32>
    %cst_47 = arith.constant 1.000000e+00 : f32
    %169 = vector.broadcast %cst_47 : f32 to vector<2x32xf32>
    %170 = arith.subf %169, %163 : vector<2x32xf32>
    %171 = arith.mulf %170, %168 : vector<2x32xf32>
    %172 = arith.mulf %163, %110 : vector<2x32xf32>
    %173 = arith.addf %171, %172 : vector<2x32xf32>
    %cst_48 = arith.constant dense<0.000000e+00> : vector<2x96xf32>
    %174 = tpu.matmul %173, %11, %cst_48 {dimension_numbers = #tpu.dot_dimension_numbers<[1], [0], [0], [1], [0, 0, 1, 1], [], []>} : vector<2x32xf32>, vector<32x96xf32>, vector<2x96xf32> -> vector<2x96xf32>
    %175 = vector.broadcast %13 : vector<1x96xf32> to vector<2x96xf32>
    %176 = arith.addf %174, %175 : vector<2x96xf32>
    %cst_49 = arith.constant dense<0.000000e+00> : vector<2x96xf32>
    %177 = tpu.matmul %142, %12, %cst_49 {dimension_numbers = #tpu.dot_dimension_numbers<[1], [0], [0], [1], [0, 0, 1, 1], [], []>} : vector<2x32xf32>, vector<32x96xf32>, vector<2x96xf32> -> vector<2x96xf32>
    %178 = vector.broadcast %14 : vector<1x96xf32> to vector<2x96xf32>
    %179 = arith.addf %177, %178 : vector<2x96xf32>
    %180 = vector.extract_strided_slice %176 {offsets = [0, 0], sizes = [2, 32], strides = [1, 1]} : vector<2x96xf32> to vector<2x32xf32>
    %181 = vector.extract_strided_slice %179 {offsets = [0, 0], sizes = [2, 32], strides = [1, 1]} : vector<2x96xf32> to vector<2x32xf32>
    %182 = arith.addf %180, %181 : vector<2x32xf32>
    %183 = arith.negf %182 : vector<2x32xf32>
    %184 = math.exp %183 : vector<2x32xf32>
    %cst_50 = arith.constant 1.000000e+00 : f32
    %185 = vector.broadcast %cst_50 : f32 to vector<2x32xf32>
    %186 = arith.addf %185, %184 : vector<2x32xf32>
    %187 = arith.divf %185, %186 : vector<2x32xf32>
    %188 = vector.extract_strided_slice %176 {offsets = [0, 32], sizes = [2, 32], strides = [1, 1]} : vector<2x96xf32> to vector<2x32xf32>
    %189 = vector.extract_strided_slice %179 {offsets = [0, 32], sizes = [2, 32], strides = [1, 1]} : vector<2x96xf32> to vector<2x32xf32>
    %190 = arith.addf %188, %189 : vector<2x32xf32>
    %191 = arith.negf %190 : vector<2x32xf32>
    %192 = math.exp %191 : vector<2x32xf32>
    %cst_51 = arith.constant 1.000000e+00 : f32
    %193 = vector.broadcast %cst_51 : f32 to vector<2x32xf32>
    %194 = arith.addf %193, %192 : vector<2x32xf32>
    %195 = arith.divf %193, %194 : vector<2x32xf32>
    %196 = vector.extract_strided_slice %176 {offsets = [0, 64], sizes = [2, 32], strides = [1, 1]} : vector<2x96xf32> to vector<2x32xf32>
    %197 = vector.extract_strided_slice %179 {offsets = [0, 64], sizes = [2, 32], strides = [1, 1]} : vector<2x96xf32> to vector<2x32xf32>
    %198 = arith.mulf %187, %197 : vector<2x32xf32>
    %199 = arith.addf %196, %198 : vector<2x32xf32>
    %200 = math.tanh %199 : vector<2x32xf32>
    %cst_52 = arith.constant 1.000000e+00 : f32
    %201 = vector.broadcast %cst_52 : f32 to vector<2x32xf32>
    %202 = arith.subf %201, %195 : vector<2x32xf32>
    %203 = arith.mulf %202, %200 : vector<2x32xf32>
    %204 = arith.mulf %195, %142 : vector<2x32xf32>
    %205 = arith.addf %203, %204 : vector<2x32xf32>
    %206 = vector.extract_strided_slice %2 {offsets = [6, 0], sizes = [2, 96], strides = [1, 1]} : vector<16x96xf32> to vector<2x96xf32>
    %207 = arith.addf %206, %8 : vector<2x96xf32>
    %cst_53 = arith.constant dense<0.000000e+00> : vector<2x96xf32>
    %208 = tpu.matmul %173, %9, %cst_53 {dimension_numbers = #tpu.dot_dimension_numbers<[1], [0], [0], [1], [0, 0, 1, 1], [], []>} : vector<2x32xf32>, vector<32x96xf32>, vector<2x96xf32> -> vector<2x96xf32>
    %209 = vector.broadcast %10 : vector<1x96xf32> to vector<2x96xf32>
    %210 = arith.addf %208, %209 : vector<2x96xf32>
    %211 = vector.extract_strided_slice %207 {offsets = [0, 0], sizes = [2, 32], strides = [1, 1]} : vector<2x96xf32> to vector<2x32xf32>
    %212 = vector.extract_strided_slice %210 {offsets = [0, 0], sizes = [2, 32], strides = [1, 1]} : vector<2x96xf32> to vector<2x32xf32>
    %213 = arith.addf %211, %212 : vector<2x32xf32>
    %214 = arith.negf %213 : vector<2x32xf32>
    %215 = math.exp %214 : vector<2x32xf32>
    %cst_54 = arith.constant 1.000000e+00 : f32
    %216 = vector.broadcast %cst_54 : f32 to vector<2x32xf32>
    %217 = arith.addf %216, %215 : vector<2x32xf32>
    %218 = arith.divf %216, %217 : vector<2x32xf32>
    %219 = vector.extract_strided_slice %207 {offsets = [0, 32], sizes = [2, 32], strides = [1, 1]} : vector<2x96xf32> to vector<2x32xf32>
    %220 = vector.extract_strided_slice %210 {offsets = [0, 32], sizes = [2, 32], strides = [1, 1]} : vector<2x96xf32> to vector<2x32xf32>
    %221 = arith.addf %219, %220 : vector<2x32xf32>
    %222 = arith.negf %221 : vector<2x32xf32>
    %223 = math.exp %222 : vector<2x32xf32>
    %cst_55 = arith.constant 1.000000e+00 : f32
    %224 = vector.broadcast %cst_55 : f32 to vector<2x32xf32>
    %225 = arith.addf %224, %223 : vector<2x32xf32>
    %226 = arith.divf %224, %225 : vector<2x32xf32>
    %227 = vector.extract_strided_slice %207 {offsets = [0, 64], sizes = [2, 32], strides = [1, 1]} : vector<2x96xf32> to vector<2x32xf32>
    %228 = vector.extract_strided_slice %210 {offsets = [0, 64], sizes = [2, 32], strides = [1, 1]} : vector<2x96xf32> to vector<2x32xf32>
    %229 = arith.mulf %218, %228 : vector<2x32xf32>
    %230 = arith.addf %227, %229 : vector<2x32xf32>
    %231 = math.tanh %230 : vector<2x32xf32>
    %cst_56 = arith.constant 1.000000e+00 : f32
    %232 = vector.broadcast %cst_56 : f32 to vector<2x32xf32>
    %233 = arith.subf %232, %226 : vector<2x32xf32>
    %234 = arith.mulf %233, %231 : vector<2x32xf32>
    %235 = arith.mulf %226, %173 : vector<2x32xf32>
    %236 = arith.addf %234, %235 : vector<2x32xf32>
    %cst_57 = arith.constant dense<0.000000e+00> : vector<2x96xf32>
    %237 = tpu.matmul %236, %11, %cst_57 {dimension_numbers = #tpu.dot_dimension_numbers<[1], [0], [0], [1], [0, 0, 1, 1], [], []>} : vector<2x32xf32>, vector<32x96xf32>, vector<2x96xf32> -> vector<2x96xf32>
    %238 = vector.broadcast %13 : vector<1x96xf32> to vector<2x96xf32>
    %239 = arith.addf %237, %238 : vector<2x96xf32>
    %cst_58 = arith.constant dense<0.000000e+00> : vector<2x96xf32>
    %240 = tpu.matmul %205, %12, %cst_58 {dimension_numbers = #tpu.dot_dimension_numbers<[1], [0], [0], [1], [0, 0, 1, 1], [], []>} : vector<2x32xf32>, vector<32x96xf32>, vector<2x96xf32> -> vector<2x96xf32>
    %241 = vector.broadcast %14 : vector<1x96xf32> to vector<2x96xf32>
    %242 = arith.addf %240, %241 : vector<2x96xf32>
    %243 = vector.extract_strided_slice %239 {offsets = [0, 0], sizes = [2, 32], strides = [1, 1]} : vector<2x96xf32> to vector<2x32xf32>
    %244 = vector.extract_strided_slice %242 {offsets = [0, 0], sizes = [2, 32], strides = [1, 1]} : vector<2x96xf32> to vector<2x32xf32>
    %245 = arith.addf %243, %244 : vector<2x32xf32>
    %246 = arith.negf %245 : vector<2x32xf32>
    %247 = math.exp %246 : vector<2x32xf32>
    %cst_59 = arith.constant 1.000000e+00 : f32
    %248 = vector.broadcast %cst_59 : f32 to vector<2x32xf32>
    %249 = arith.addf %248, %247 : vector<2x32xf32>
    %250 = arith.divf %248, %249 : vector<2x32xf32>
    %251 = vector.extract_strided_slice %239 {offsets = [0, 32], sizes = [2, 32], strides = [1, 1]} : vector<2x96xf32> to vector<2x32xf32>
    %252 = vector.extract_strided_slice %242 {offsets = [0, 32], sizes = [2, 32], strides = [1, 1]} : vector<2x96xf32> to vector<2x32xf32>
    %253 = arith.addf %251, %252 : vector<2x32xf32>
    %254 = arith.negf %253 : vector<2x32xf32>
    %255 = math.exp %254 : vector<2x32xf32>
    %cst_60 = arith.constant 1.000000e+00 : f32
    %256 = vector.broadcast %cst_60 : f32 to vector<2x32xf32>
    %257 = arith.addf %256, %255 : vector<2x32xf32>
    %258 = arith.divf %256, %257 : vector<2x32xf32>
    %259 = vector.extract_strided_slice %239 {offsets = [0, 64], sizes = [2, 32], strides = [1, 1]} : vector<2x96xf32> to vector<2x32xf32>
    %260 = vector.extract_strided_slice %242 {offsets = [0, 64], sizes = [2, 32], strides = [1, 1]} : vector<2x96xf32> to vector<2x32xf32>
    %261 = arith.mulf %250, %260 : vector<2x32xf32>
    %262 = arith.addf %259, %261 : vector<2x32xf32>
    %263 = math.tanh %262 : vector<2x32xf32>
    %cst_61 = arith.constant 1.000000e+00 : f32
    %264 = vector.broadcast %cst_61 : f32 to vector<2x32xf32>
    %265 = arith.subf %264, %258 : vector<2x32xf32>
    %266 = arith.mulf %265, %263 : vector<2x32xf32>
    %267 = arith.mulf %258, %205 : vector<2x32xf32>
    %268 = arith.addf %266, %267 : vector<2x32xf32>
    %269 = vector.extract_strided_slice %2 {offsets = [8, 0], sizes = [2, 96], strides = [1, 1]} : vector<16x96xf32> to vector<2x96xf32>
    %270 = arith.addf %269, %8 : vector<2x96xf32>
    %cst_62 = arith.constant dense<0.000000e+00> : vector<2x96xf32>
    %271 = tpu.matmul %236, %9, %cst_62 {dimension_numbers = #tpu.dot_dimension_numbers<[1], [0], [0], [1], [0, 0, 1, 1], [], []>} : vector<2x32xf32>, vector<32x96xf32>, vector<2x96xf32> -> vector<2x96xf32>
    %272 = vector.broadcast %10 : vector<1x96xf32> to vector<2x96xf32>
    %273 = arith.addf %271, %272 : vector<2x96xf32>
    %274 = vector.extract_strided_slice %270 {offsets = [0, 0], sizes = [2, 32], strides = [1, 1]} : vector<2x96xf32> to vector<2x32xf32>
    %275 = vector.extract_strided_slice %273 {offsets = [0, 0], sizes = [2, 32], strides = [1, 1]} : vector<2x96xf32> to vector<2x32xf32>
    %276 = arith.addf %274, %275 : vector<2x32xf32>
    %277 = arith.negf %276 : vector<2x32xf32>
    %278 = math.exp %277 : vector<2x32xf32>
    %cst_63 = arith.constant 1.000000e+00 : f32
    %279 = vector.broadcast %cst_63 : f32 to vector<2x32xf32>
    %280 = arith.addf %279, %278 : vector<2x32xf32>
    %281 = arith.divf %279, %280 : vector<2x32xf32>
    %282 = vector.extract_strided_slice %270 {offsets = [0, 32], sizes = [2, 32], strides = [1, 1]} : vector<2x96xf32> to vector<2x32xf32>
    %283 = vector.extract_strided_slice %273 {offsets = [0, 32], sizes = [2, 32], strides = [1, 1]} : vector<2x96xf32> to vector<2x32xf32>
    %284 = arith.addf %282, %283 : vector<2x32xf32>
    %285 = arith.negf %284 : vector<2x32xf32>
    %286 = math.exp %285 : vector<2x32xf32>
    %cst_64 = arith.constant 1.000000e+00 : f32
    %287 = vector.broadcast %cst_64 : f32 to vector<2x32xf32>
    %288 = arith.addf %287, %286 : vector<2x32xf32>
    %289 = arith.divf %287, %288 : vector<2x32xf32>
    %290 = vector.extract_strided_slice %270 {offsets = [0, 64], sizes = [2, 32], strides = [1, 1]} : vector<2x96xf32> to vector<2x32xf32>
    %291 = vector.extract_strided_slice %273 {offsets = [0, 64], sizes = [2, 32], strides = [1, 1]} : vector<2x96xf32> to vector<2x32xf32>
    %292 = arith.mulf %281, %291 : vector<2x32xf32>
    %293 = arith.addf %290, %292 : vector<2x32xf32>
    %294 = math.tanh %293 : vector<2x32xf32>
    %cst_65 = arith.constant 1.000000e+00 : f32
    %295 = vector.broadcast %cst_65 : f32 to vector<2x32xf32>
    %296 = arith.subf %295, %289 : vector<2x32xf32>
    %297 = arith.mulf %296, %294 : vector<2x32xf32>
    %298 = arith.mulf %289, %236 : vector<2x32xf32>
    %299 = arith.addf %297, %298 : vector<2x32xf32>
    %cst_66 = arith.constant dense<0.000000e+00> : vector<2x96xf32>
    %300 = tpu.matmul %299, %11, %cst_66 {dimension_numbers = #tpu.dot_dimension_numbers<[1], [0], [0], [1], [0, 0, 1, 1], [], []>} : vector<2x32xf32>, vector<32x96xf32>, vector<2x96xf32> -> vector<2x96xf32>
    %301 = vector.broadcast %13 : vector<1x96xf32> to vector<2x96xf32>
    %302 = arith.addf %300, %301 : vector<2x96xf32>
    %cst_67 = arith.constant dense<0.000000e+00> : vector<2x96xf32>
    %303 = tpu.matmul %268, %12, %cst_67 {dimension_numbers = #tpu.dot_dimension_numbers<[1], [0], [0], [1], [0, 0, 1, 1], [], []>} : vector<2x32xf32>, vector<32x96xf32>, vector<2x96xf32> -> vector<2x96xf32>
    %304 = vector.broadcast %14 : vector<1x96xf32> to vector<2x96xf32>
    %305 = arith.addf %303, %304 : vector<2x96xf32>
    %306 = vector.extract_strided_slice %302 {offsets = [0, 0], sizes = [2, 32], strides = [1, 1]} : vector<2x96xf32> to vector<2x32xf32>
    %307 = vector.extract_strided_slice %305 {offsets = [0, 0], sizes = [2, 32], strides = [1, 1]} : vector<2x96xf32> to vector<2x32xf32>
    %308 = arith.addf %306, %307 : vector<2x32xf32>
    %309 = arith.negf %308 : vector<2x32xf32>
    %310 = math.exp %309 : vector<2x32xf32>
    %cst_68 = arith.constant 1.000000e+00 : f32
    %311 = vector.broadcast %cst_68 : f32 to vector<2x32xf32>
    %312 = arith.addf %311, %310 : vector<2x32xf32>
    %313 = arith.divf %311, %312 : vector<2x32xf32>
    %314 = vector.extract_strided_slice %302 {offsets = [0, 32], sizes = [2, 32], strides = [1, 1]} : vector<2x96xf32> to vector<2x32xf32>
    %315 = vector.extract_strided_slice %305 {offsets = [0, 32], sizes = [2, 32], strides = [1, 1]} : vector<2x96xf32> to vector<2x32xf32>
    %316 = arith.addf %314, %315 : vector<2x32xf32>
    %317 = arith.negf %316 : vector<2x32xf32>
    %318 = math.exp %317 : vector<2x32xf32>
    %cst_69 = arith.constant 1.000000e+00 : f32
    %319 = vector.broadcast %cst_69 : f32 to vector<2x32xf32>
    %320 = arith.addf %319, %318 : vector<2x32xf32>
    %321 = arith.divf %319, %320 : vector<2x32xf32>
    %322 = vector.extract_strided_slice %302 {offsets = [0, 64], sizes = [2, 32], strides = [1, 1]} : vector<2x96xf32> to vector<2x32xf32>
    %323 = vector.extract_strided_slice %305 {offsets = [0, 64], sizes = [2, 32], strides = [1, 1]} : vector<2x96xf32> to vector<2x32xf32>
    %324 = arith.mulf %313, %323 : vector<2x32xf32>
    %325 = arith.addf %322, %324 : vector<2x32xf32>
    %326 = math.tanh %325 : vector<2x32xf32>
    %cst_70 = arith.constant 1.000000e+00 : f32
    %327 = vector.broadcast %cst_70 : f32 to vector<2x32xf32>
    %328 = arith.subf %327, %321 : vector<2x32xf32>
    %329 = arith.mulf %328, %326 : vector<2x32xf32>
    %330 = arith.mulf %321, %268 : vector<2x32xf32>
    %331 = arith.addf %329, %330 : vector<2x32xf32>
    %332 = vector.extract_strided_slice %2 {offsets = [10, 0], sizes = [2, 96], strides = [1, 1]} : vector<16x96xf32> to vector<2x96xf32>
    %333 = arith.addf %332, %8 : vector<2x96xf32>
    %cst_71 = arith.constant dense<0.000000e+00> : vector<2x96xf32>
    %334 = tpu.matmul %299, %9, %cst_71 {dimension_numbers = #tpu.dot_dimension_numbers<[1], [0], [0], [1], [0, 0, 1, 1], [], []>} : vector<2x32xf32>, vector<32x96xf32>, vector<2x96xf32> -> vector<2x96xf32>
    %335 = vector.broadcast %10 : vector<1x96xf32> to vector<2x96xf32>
    %336 = arith.addf %334, %335 : vector<2x96xf32>
    %337 = vector.extract_strided_slice %333 {offsets = [0, 0], sizes = [2, 32], strides = [1, 1]} : vector<2x96xf32> to vector<2x32xf32>
    %338 = vector.extract_strided_slice %336 {offsets = [0, 0], sizes = [2, 32], strides = [1, 1]} : vector<2x96xf32> to vector<2x32xf32>
    %339 = arith.addf %337, %338 : vector<2x32xf32>
    %340 = arith.negf %339 : vector<2x32xf32>
    %341 = math.exp %340 : vector<2x32xf32>
    %cst_72 = arith.constant 1.000000e+00 : f32
    %342 = vector.broadcast %cst_72 : f32 to vector<2x32xf32>
    %343 = arith.addf %342, %341 : vector<2x32xf32>
    %344 = arith.divf %342, %343 : vector<2x32xf32>
    %345 = vector.extract_strided_slice %333 {offsets = [0, 32], sizes = [2, 32], strides = [1, 1]} : vector<2x96xf32> to vector<2x32xf32>
    %346 = vector.extract_strided_slice %336 {offsets = [0, 32], sizes = [2, 32], strides = [1, 1]} : vector<2x96xf32> to vector<2x32xf32>
    %347 = arith.addf %345, %346 : vector<2x32xf32>
    %348 = arith.negf %347 : vector<2x32xf32>
    %349 = math.exp %348 : vector<2x32xf32>
    %cst_73 = arith.constant 1.000000e+00 : f32
    %350 = vector.broadcast %cst_73 : f32 to vector<2x32xf32>
    %351 = arith.addf %350, %349 : vector<2x32xf32>
    %352 = arith.divf %350, %351 : vector<2x32xf32>
    %353 = vector.extract_strided_slice %333 {offsets = [0, 64], sizes = [2, 32], strides = [1, 1]} : vector<2x96xf32> to vector<2x32xf32>
    %354 = vector.extract_strided_slice %336 {offsets = [0, 64], sizes = [2, 32], strides = [1, 1]} : vector<2x96xf32> to vector<2x32xf32>
    %355 = arith.mulf %344, %354 : vector<2x32xf32>
    %356 = arith.addf %353, %355 : vector<2x32xf32>
    %357 = math.tanh %356 : vector<2x32xf32>
    %cst_74 = arith.constant 1.000000e+00 : f32
    %358 = vector.broadcast %cst_74 : f32 to vector<2x32xf32>
    %359 = arith.subf %358, %352 : vector<2x32xf32>
    %360 = arith.mulf %359, %357 : vector<2x32xf32>
    %361 = arith.mulf %352, %299 : vector<2x32xf32>
    %362 = arith.addf %360, %361 : vector<2x32xf32>
    %cst_75 = arith.constant dense<0.000000e+00> : vector<2x96xf32>
    %363 = tpu.matmul %362, %11, %cst_75 {dimension_numbers = #tpu.dot_dimension_numbers<[1], [0], [0], [1], [0, 0, 1, 1], [], []>} : vector<2x32xf32>, vector<32x96xf32>, vector<2x96xf32> -> vector<2x96xf32>
    %364 = vector.broadcast %13 : vector<1x96xf32> to vector<2x96xf32>
    %365 = arith.addf %363, %364 : vector<2x96xf32>
    %cst_76 = arith.constant dense<0.000000e+00> : vector<2x96xf32>
    %366 = tpu.matmul %331, %12, %cst_76 {dimension_numbers = #tpu.dot_dimension_numbers<[1], [0], [0], [1], [0, 0, 1, 1], [], []>} : vector<2x32xf32>, vector<32x96xf32>, vector<2x96xf32> -> vector<2x96xf32>
    %367 = vector.broadcast %14 : vector<1x96xf32> to vector<2x96xf32>
    %368 = arith.addf %366, %367 : vector<2x96xf32>
    %369 = vector.extract_strided_slice %365 {offsets = [0, 0], sizes = [2, 32], strides = [1, 1]} : vector<2x96xf32> to vector<2x32xf32>
    %370 = vector.extract_strided_slice %368 {offsets = [0, 0], sizes = [2, 32], strides = [1, 1]} : vector<2x96xf32> to vector<2x32xf32>
    %371 = arith.addf %369, %370 : vector<2x32xf32>
    %372 = arith.negf %371 : vector<2x32xf32>
    %373 = math.exp %372 : vector<2x32xf32>
    %cst_77 = arith.constant 1.000000e+00 : f32
    %374 = vector.broadcast %cst_77 : f32 to vector<2x32xf32>
    %375 = arith.addf %374, %373 : vector<2x32xf32>
    %376 = arith.divf %374, %375 : vector<2x32xf32>
    %377 = vector.extract_strided_slice %365 {offsets = [0, 32], sizes = [2, 32], strides = [1, 1]} : vector<2x96xf32> to vector<2x32xf32>
    %378 = vector.extract_strided_slice %368 {offsets = [0, 32], sizes = [2, 32], strides = [1, 1]} : vector<2x96xf32> to vector<2x32xf32>
    %379 = arith.addf %377, %378 : vector<2x32xf32>
    %380 = arith.negf %379 : vector<2x32xf32>
    %381 = math.exp %380 : vector<2x32xf32>
    %cst_78 = arith.constant 1.000000e+00 : f32
    %382 = vector.broadcast %cst_78 : f32 to vector<2x32xf32>
    %383 = arith.addf %382, %381 : vector<2x32xf32>
    %384 = arith.divf %382, %383 : vector<2x32xf32>
    %385 = vector.extract_strided_slice %365 {offsets = [0, 64], sizes = [2, 32], strides = [1, 1]} : vector<2x96xf32> to vector<2x32xf32>
    %386 = vector.extract_strided_slice %368 {offsets = [0, 64], sizes = [2, 32], strides = [1, 1]} : vector<2x96xf32> to vector<2x32xf32>
    %387 = arith.mulf %376, %386 : vector<2x32xf32>
    %388 = arith.addf %385, %387 : vector<2x32xf32>
    %389 = math.tanh %388 : vector<2x32xf32>
    %cst_79 = arith.constant 1.000000e+00 : f32
    %390 = vector.broadcast %cst_79 : f32 to vector<2x32xf32>
    %391 = arith.subf %390, %384 : vector<2x32xf32>
    %392 = arith.mulf %391, %389 : vector<2x32xf32>
    %393 = arith.mulf %384, %331 : vector<2x32xf32>
    %394 = arith.addf %392, %393 : vector<2x32xf32>
    %395 = vector.extract_strided_slice %2 {offsets = [12, 0], sizes = [2, 96], strides = [1, 1]} : vector<16x96xf32> to vector<2x96xf32>
    %396 = arith.addf %395, %8 : vector<2x96xf32>
    %cst_80 = arith.constant dense<0.000000e+00> : vector<2x96xf32>
    %397 = tpu.matmul %362, %9, %cst_80 {dimension_numbers = #tpu.dot_dimension_numbers<[1], [0], [0], [1], [0, 0, 1, 1], [], []>} : vector<2x32xf32>, vector<32x96xf32>, vector<2x96xf32> -> vector<2x96xf32>
    %398 = vector.broadcast %10 : vector<1x96xf32> to vector<2x96xf32>
    %399 = arith.addf %397, %398 : vector<2x96xf32>
    %400 = vector.extract_strided_slice %396 {offsets = [0, 0], sizes = [2, 32], strides = [1, 1]} : vector<2x96xf32> to vector<2x32xf32>
    %401 = vector.extract_strided_slice %399 {offsets = [0, 0], sizes = [2, 32], strides = [1, 1]} : vector<2x96xf32> to vector<2x32xf32>
    %402 = arith.addf %400, %401 : vector<2x32xf32>
    %403 = arith.negf %402 : vector<2x32xf32>
    %404 = math.exp %403 : vector<2x32xf32>
    %cst_81 = arith.constant 1.000000e+00 : f32
    %405 = vector.broadcast %cst_81 : f32 to vector<2x32xf32>
    %406 = arith.addf %405, %404 : vector<2x32xf32>
    %407 = arith.divf %405, %406 : vector<2x32xf32>
    %408 = vector.extract_strided_slice %396 {offsets = [0, 32], sizes = [2, 32], strides = [1, 1]} : vector<2x96xf32> to vector<2x32xf32>
    %409 = vector.extract_strided_slice %399 {offsets = [0, 32], sizes = [2, 32], strides = [1, 1]} : vector<2x96xf32> to vector<2x32xf32>
    %410 = arith.addf %408, %409 : vector<2x32xf32>
    %411 = arith.negf %410 : vector<2x32xf32>
    %412 = math.exp %411 : vector<2x32xf32>
    %cst_82 = arith.constant 1.000000e+00 : f32
    %413 = vector.broadcast %cst_82 : f32 to vector<2x32xf32>
    %414 = arith.addf %413, %412 : vector<2x32xf32>
    %415 = arith.divf %413, %414 : vector<2x32xf32>
    %416 = vector.extract_strided_slice %396 {offsets = [0, 64], sizes = [2, 32], strides = [1, 1]} : vector<2x96xf32> to vector<2x32xf32>
    %417 = vector.extract_strided_slice %399 {offsets = [0, 64], sizes = [2, 32], strides = [1, 1]} : vector<2x96xf32> to vector<2x32xf32>
    %418 = arith.mulf %407, %417 : vector<2x32xf32>
    %419 = arith.addf %416, %418 : vector<2x32xf32>
    %420 = math.tanh %419 : vector<2x32xf32>
    %cst_83 = arith.constant 1.000000e+00 : f32
    %421 = vector.broadcast %cst_83 : f32 to vector<2x32xf32>
    %422 = arith.subf %421, %415 : vector<2x32xf32>
    %423 = arith.mulf %422, %420 : vector<2x32xf32>
    %424 = arith.mulf %415, %362 : vector<2x32xf32>
    %425 = arith.addf %423, %424 : vector<2x32xf32>
    %cst_84 = arith.constant dense<0.000000e+00> : vector<2x96xf32>
    %426 = tpu.matmul %425, %11, %cst_84 {dimension_numbers = #tpu.dot_dimension_numbers<[1], [0], [0], [1], [0, 0, 1, 1], [], []>} : vector<2x32xf32>, vector<32x96xf32>, vector<2x96xf32> -> vector<2x96xf32>
    %427 = vector.broadcast %13 : vector<1x96xf32> to vector<2x96xf32>
    %428 = arith.addf %426, %427 : vector<2x96xf32>
    %cst_85 = arith.constant dense<0.000000e+00> : vector<2x96xf32>
    %429 = tpu.matmul %394, %12, %cst_85 {dimension_numbers = #tpu.dot_dimension_numbers<[1], [0], [0], [1], [0, 0, 1, 1], [], []>} : vector<2x32xf32>, vector<32x96xf32>, vector<2x96xf32> -> vector<2x96xf32>
    %430 = vector.broadcast %14 : vector<1x96xf32> to vector<2x96xf32>
    %431 = arith.addf %429, %430 : vector<2x96xf32>
    %432 = vector.extract_strided_slice %428 {offsets = [0, 0], sizes = [2, 32], strides = [1, 1]} : vector<2x96xf32> to vector<2x32xf32>
    %433 = vector.extract_strided_slice %431 {offsets = [0, 0], sizes = [2, 32], strides = [1, 1]} : vector<2x96xf32> to vector<2x32xf32>
    %434 = arith.addf %432, %433 : vector<2x32xf32>
    %435 = arith.negf %434 : vector<2x32xf32>
    %436 = math.exp %435 : vector<2x32xf32>
    %cst_86 = arith.constant 1.000000e+00 : f32
    %437 = vector.broadcast %cst_86 : f32 to vector<2x32xf32>
    %438 = arith.addf %437, %436 : vector<2x32xf32>
    %439 = arith.divf %437, %438 : vector<2x32xf32>
    %440 = vector.extract_strided_slice %428 {offsets = [0, 32], sizes = [2, 32], strides = [1, 1]} : vector<2x96xf32> to vector<2x32xf32>
    %441 = vector.extract_strided_slice %431 {offsets = [0, 32], sizes = [2, 32], strides = [1, 1]} : vector<2x96xf32> to vector<2x32xf32>
    %442 = arith.addf %440, %441 : vector<2x32xf32>
    %443 = arith.negf %442 : vector<2x32xf32>
    %444 = math.exp %443 : vector<2x32xf32>
    %cst_87 = arith.constant 1.000000e+00 : f32
    %445 = vector.broadcast %cst_87 : f32 to vector<2x32xf32>
    %446 = arith.addf %445, %444 : vector<2x32xf32>
    %447 = arith.divf %445, %446 : vector<2x32xf32>
    %448 = vector.extract_strided_slice %428 {offsets = [0, 64], sizes = [2, 32], strides = [1, 1]} : vector<2x96xf32> to vector<2x32xf32>
    %449 = vector.extract_strided_slice %431 {offsets = [0, 64], sizes = [2, 32], strides = [1, 1]} : vector<2x96xf32> to vector<2x32xf32>
    %450 = arith.mulf %439, %449 : vector<2x32xf32>
    %451 = arith.addf %448, %450 : vector<2x32xf32>
    %452 = math.tanh %451 : vector<2x32xf32>
    %cst_88 = arith.constant 1.000000e+00 : f32
    %453 = vector.broadcast %cst_88 : f32 to vector<2x32xf32>
    %454 = arith.subf %453, %447 : vector<2x32xf32>
    %455 = arith.mulf %454, %452 : vector<2x32xf32>
    %456 = arith.mulf %447, %394 : vector<2x32xf32>
    %457 = arith.addf %455, %456 : vector<2x32xf32>
    %458 = vector.extract_strided_slice %2 {offsets = [14, 0], sizes = [2, 96], strides = [1, 1]} : vector<16x96xf32> to vector<2x96xf32>
    %459 = arith.addf %458, %8 : vector<2x96xf32>
    %cst_89 = arith.constant dense<0.000000e+00> : vector<2x96xf32>
    %460 = tpu.matmul %425, %9, %cst_89 {dimension_numbers = #tpu.dot_dimension_numbers<[1], [0], [0], [1], [0, 0, 1, 1], [], []>} : vector<2x32xf32>, vector<32x96xf32>, vector<2x96xf32> -> vector<2x96xf32>
    %461 = vector.broadcast %10 : vector<1x96xf32> to vector<2x96xf32>
    %462 = arith.addf %460, %461 : vector<2x96xf32>
    %463 = vector.extract_strided_slice %459 {offsets = [0, 0], sizes = [2, 32], strides = [1, 1]} : vector<2x96xf32> to vector<2x32xf32>
    %464 = vector.extract_strided_slice %462 {offsets = [0, 0], sizes = [2, 32], strides = [1, 1]} : vector<2x96xf32> to vector<2x32xf32>
    %465 = arith.addf %463, %464 : vector<2x32xf32>
    %466 = arith.negf %465 : vector<2x32xf32>
    %467 = math.exp %466 : vector<2x32xf32>
    %cst_90 = arith.constant 1.000000e+00 : f32
    %468 = vector.broadcast %cst_90 : f32 to vector<2x32xf32>
    %469 = arith.addf %468, %467 : vector<2x32xf32>
    %470 = arith.divf %468, %469 : vector<2x32xf32>
    %471 = vector.extract_strided_slice %459 {offsets = [0, 32], sizes = [2, 32], strides = [1, 1]} : vector<2x96xf32> to vector<2x32xf32>
    %472 = vector.extract_strided_slice %462 {offsets = [0, 32], sizes = [2, 32], strides = [1, 1]} : vector<2x96xf32> to vector<2x32xf32>
    %473 = arith.addf %471, %472 : vector<2x32xf32>
    %474 = arith.negf %473 : vector<2x32xf32>
    %475 = math.exp %474 : vector<2x32xf32>
    %cst_91 = arith.constant 1.000000e+00 : f32
    %476 = vector.broadcast %cst_91 : f32 to vector<2x32xf32>
    %477 = arith.addf %476, %475 : vector<2x32xf32>
    %478 = arith.divf %476, %477 : vector<2x32xf32>
    %479 = vector.extract_strided_slice %459 {offsets = [0, 64], sizes = [2, 32], strides = [1, 1]} : vector<2x96xf32> to vector<2x32xf32>
    %480 = vector.extract_strided_slice %462 {offsets = [0, 64], sizes = [2, 32], strides = [1, 1]} : vector<2x96xf32> to vector<2x32xf32>
    %481 = arith.mulf %470, %480 : vector<2x32xf32>
    %482 = arith.addf %479, %481 : vector<2x32xf32>
    %483 = math.tanh %482 : vector<2x32xf32>
    %cst_92 = arith.constant 1.000000e+00 : f32
    %484 = vector.broadcast %cst_92 : f32 to vector<2x32xf32>
    %485 = arith.subf %484, %478 : vector<2x32xf32>
    %486 = arith.mulf %485, %483 : vector<2x32xf32>
    %487 = arith.mulf %478, %425 : vector<2x32xf32>
    %488 = arith.addf %486, %487 : vector<2x32xf32>
    %cst_93 = arith.constant dense<0.000000e+00> : vector<2x96xf32>
    %489 = tpu.matmul %488, %11, %cst_93 {dimension_numbers = #tpu.dot_dimension_numbers<[1], [0], [0], [1], [0, 0, 1, 1], [], []>} : vector<2x32xf32>, vector<32x96xf32>, vector<2x96xf32> -> vector<2x96xf32>
    %490 = vector.broadcast %13 : vector<1x96xf32> to vector<2x96xf32>
    %491 = arith.addf %489, %490 : vector<2x96xf32>
    %cst_94 = arith.constant dense<0.000000e+00> : vector<2x96xf32>
    %492 = tpu.matmul %457, %12, %cst_94 {dimension_numbers = #tpu.dot_dimension_numbers<[1], [0], [0], [1], [0, 0, 1, 1], [], []>} : vector<2x32xf32>, vector<32x96xf32>, vector<2x96xf32> -> vector<2x96xf32>
    %493 = vector.broadcast %14 : vector<1x96xf32> to vector<2x96xf32>
    %494 = arith.addf %492, %493 : vector<2x96xf32>
    %495 = vector.extract_strided_slice %491 {offsets = [0, 0], sizes = [2, 32], strides = [1, 1]} : vector<2x96xf32> to vector<2x32xf32>
    %496 = vector.extract_strided_slice %494 {offsets = [0, 0], sizes = [2, 32], strides = [1, 1]} : vector<2x96xf32> to vector<2x32xf32>
    %497 = arith.addf %495, %496 : vector<2x32xf32>
    %498 = arith.negf %497 : vector<2x32xf32>
    %499 = math.exp %498 : vector<2x32xf32>
    %cst_95 = arith.constant 1.000000e+00 : f32
    %500 = vector.broadcast %cst_95 : f32 to vector<2x32xf32>
    %501 = arith.addf %500, %499 : vector<2x32xf32>
    %502 = arith.divf %500, %501 : vector<2x32xf32>
    %503 = vector.extract_strided_slice %491 {offsets = [0, 32], sizes = [2, 32], strides = [1, 1]} : vector<2x96xf32> to vector<2x32xf32>
    %504 = vector.extract_strided_slice %494 {offsets = [0, 32], sizes = [2, 32], strides = [1, 1]} : vector<2x96xf32> to vector<2x32xf32>
    %505 = arith.addf %503, %504 : vector<2x32xf32>
    %506 = arith.negf %505 : vector<2x32xf32>
    %507 = math.exp %506 : vector<2x32xf32>
    %cst_96 = arith.constant 1.000000e+00 : f32
    %508 = vector.broadcast %cst_96 : f32 to vector<2x32xf32>
    %509 = arith.addf %508, %507 : vector<2x32xf32>
    %510 = arith.divf %508, %509 : vector<2x32xf32>
    %511 = vector.extract_strided_slice %491 {offsets = [0, 64], sizes = [2, 32], strides = [1, 1]} : vector<2x96xf32> to vector<2x32xf32>
    %512 = vector.extract_strided_slice %494 {offsets = [0, 64], sizes = [2, 32], strides = [1, 1]} : vector<2x96xf32> to vector<2x32xf32>
    %513 = arith.mulf %502, %512 : vector<2x32xf32>
    %514 = arith.addf %511, %513 : vector<2x32xf32>
    %515 = math.tanh %514 : vector<2x32xf32>
    %cst_97 = arith.constant 1.000000e+00 : f32
    %516 = vector.broadcast %cst_97 : f32 to vector<2x32xf32>
    %517 = arith.subf %516, %510 : vector<2x32xf32>
    %518 = arith.mulf %517, %515 : vector<2x32xf32>
    %519 = arith.mulf %510, %457 : vector<2x32xf32>
    %520 = arith.addf %518, %519 : vector<2x32xf32>
    %521 = tpu.concatenate %79, %142, %205, %268, %331, %394, %457, %520 in 0 : vector<2x32xf32>, vector<2x32xf32>, vector<2x32xf32>, vector<2x32xf32>, vector<2x32xf32>, vector<2x32xf32>, vector<2x32xf32>, vector<2x32xf32> -> vector<16x32xf32>
    %c0_98 = arith.constant 0 : index
    %c0_99 = arith.constant 0 : index
    %522 = vector.load %arg12[%c0_98, %c0_99] : memref<32x32xf32, #tpu.memory_space<vmem>>, vector<32x32xf32>
    %cst_100 = arith.constant dense<0.000000e+00> : vector<16x32xf32>
    %523 = tpu.matmul %521, %522, %cst_100 {dimension_numbers = #tpu.dot_dimension_numbers<[1], [0], [0], [1], [0, 0, 1, 1], [], []>} : vector<16x32xf32>, vector<32x32xf32>, vector<16x32xf32> -> vector<16x32xf32>
    %c0_101 = arith.constant 0 : index
    %c0_102 = arith.constant 0 : index
    %524 = vector.load %arg13[%c0_101, %c0_102] : memref<1x32xf32, #tpu.memory_space<vmem>>, vector<1x32xf32>
    %525 = vector.broadcast %524 : vector<1x32xf32> to vector<16x32xf32>
    %526 = arith.addf %523, %525 : vector<16x32xf32>
    %c0_103 = arith.constant 0 : index
    %c0_104 = arith.constant 0 : index
    %527 = vector.load %arg14[%c0_103, %c0_104] : memref<16x32xf32, #tpu.memory_space<vmem>>, vector<16x32xf32>
    tpu.vector_store %arg14[%c0_103, %c0_104], %526 {strides = array<i32>} : memref<16x32xf32, #tpu.memory_space<vmem>>, vector<16x32xf32>,
    %c0_105 = arith.constant 0 : index
    %c0_106 = arith.constant 0 : index
    %528 = vector.load %arg15[%c0_105, %c0_106] : memref<2x32xf32, #tpu.memory_space<vmem>>, vector<2x32xf32>
    tpu.vector_store %arg15[%c0_105, %c0_106], %488 {strides = array<i32>} : memref<2x32xf32, #tpu.memory_space<vmem>>, vector<2x32xf32>,
    %c0_107 = arith.constant 0 : index
    %c0_108 = arith.constant 0 : index
    %529 = vector.load %arg16[%c0_107, %c0_108] : memref<2x32xf32, #tpu.memory_space<vmem>>, vector<2x32xf32>
    tpu.vector_store %arg16[%c0_107, %c0_108], %520 {strides = array<i32>} : memref<2x32xf32, #tpu.memory_space<vmem>>, vector<2x32xf32>,
    return
  }
}

</mosaic_0001>

<bundles_post_ra>
// kernel: seq2seq_decoder_forward.1
= control target key start
LH: loop header
LB: loop body
LE: loop exit
PB: predicated region body
PF: predicated region fallthrough
CT: control target
= control target key end

     0   :  { %vm93_vm0 = vcmask 261120   ;;  %vm54_vm1 = vcmask 130048   ;;  %s1619_s19 = smov 64   ;;  %s2197_s5 = inlined_call_operand.vmem [shape: f32[32,96], index: 5, kind: input, shape index: {}]   ;;  %s2198_s4 = inlined_call_operand.vmem [shape: f32[32,96], index: 4, kind: input, shape index: {}]   ;;  %s2199_s3 = inlined_call_operand.vmem [shape: f32[16,96], index: 3, kind: input, shape index: {}]   ;;  %s2200_s1 = inlined_call_operand.vmem [shape: f32[2,32], index: 1, kind: input, shape index: {}]   ;;  %s2201_s2 = inlined_call_operand.vmem [shape: f32[2,32], index: 2, kind: input, shape index: {}]   ;;  %s2202_s0 = inlined_call_operand.vmem [shape: f32[16,16], index: 0, kind: input, shape index: {}]   ;;  %s2203_s6 = inlined_call_operand.vmem [shape: f32[1,96], index: 6, kind: input, shape index: {}]   ;;  %s2204_s7 = inlined_call_operand.vmem [shape: f32[1,96], index: 7, kind: input, shape index: {}]   ;;  %s2205_s9 = inlined_call_operand.vmem [shape: f32[32,96], index: 9, kind: input, shape index: {}]   ;;  %s2206_s11 = inlined_call_operand.vmem [shape: f32[1,96], index: 11, kind: input, shape index: {}]   ;;  %s2207_s8 = inlined_call_operand.vmem [shape: f32[32,96], index: 8, kind: input, shape index: {}]   ;;  %s2208_s10 = inlined_call_operand.vmem [shape: f32[1,96], index: 10, kind: input, shape index: {}]   ;;  %s2209_s12 = inlined_call_operand.vmem [shape: f32[32,32], index: 12, kind: input, shape index: {}]   ;;  %s2210_s13 = inlined_call_operand.vmem [shape: f32[1,32], index: 13, kind: input, shape index: {}]   ;;  %s2211_s14 = inlined_call_operand.vmem [shape: f32[16,32], index: 14, kind: output, shape index: {0}]   ;;  %s2212_s15 = inlined_call_operand.vmem [shape: f32[2,32], index: 15, kind: output, shape index: {1}]   ;;  %s2213_s16 = inlined_call_operand.vmem [shape: f32[2,32], index: 16, kind: output, shape index: {2}]  }
   0x1   :  { %2215 = sst [smem:[#allocation2_spill]] %s2197_s5  ;;  %v88_v2 = vld [vmem:[%s2198_s4 + $0x18] sm:$0xff]  ;;  %v87_v3 = vld [vmem:[%s2198_s4 + $0x10] sm:$0xff]  ;;  %v86_v5 = vld [vmem:[%s2198_s4 + $0x8] sm:$0xff] }
   0x2   :  { %s2216_s23 = sld [smem:[#allocation2_spill]]  ;;  %109 = vmatpush.msra.mxu1 %v88_v2  ;;  %v53_v6 = vld [vmem:[%s2199_s3 + $0x8] sm:$0xff]  ;;  %v52_v7 = vld [vmem:[%s2199_s3] sm:$0xff]  ;;  %v1808_v47 = vld [vmem:[%s2205_s9 + $0x18] sm:$0xff] }
   0x3   :  { %75 = vmatpush.msra.mxu0 %v53_v6  ;;  %v85_v9 = vld [vmem:[%s2198_s4] sm:$0xff]  ;;  %v51_v13 = vld [vmem:[%s2202_s0 + $0x8] sm:$0xff]  ;;  %v1814_v48 = vld [vmem:[%s2205_s9 + $0x10] sm:$0xff] }
   0x4   :  { %110 = vmatpush.msra.mxu1 %v87_v3  ;;  %v1751_v10 = vld [vmem:[%s2200_s1] sm:$0x3]  ;;  %v1819_v49 = vld [vmem:[%s2205_s9 + $0x8] sm:$0xff]  ;;  %v1825_v50 = vld [vmem:[%s2207_s8 + $0x18] sm:$0xff] }
   0x5   :  { %v1756_v11 = vld [vmem:[%s2201_s2] sm:$0x3]  ;;  %76 = vmatpush.msra.mxu0 %v52_v7  ;;  %v1830_v51 = vld [vmem:[%s2207_s8 + $0x10] sm:$0xff]  ;;  %380 = vmatpush.msra.mxu3 %v1825_v50  ;;  %v1843_v53 = vld [vmem:[%s2207_s8 + $0x8] sm:$0xff] }
   0x6   :  { %111 = vmatpush.msra.mxu1 %v86_v5  ;;  %v50_v12 = vld [vmem:[%s2202_s0] sm:$0xff]  ;;  %s1620_s0 = smov 96  }
   0x7   :  { %1463 = vmatmul.msk.f32.vlgmr.msra.gmra.mxu0 %vm54_vm1, %v50_v12  ;;  %v1776_v14 = vld [vmem:[%s2204_s7] ss:$0 sm:$0xff]  ;;  %381 = vmatpush.msra.mxu3 %v1830_v51 }
   0x8   :  { %v1710_v0 = vld [vmem:[%s2216_s23 + $0x18] sm:$0xff]  ;;  %v1715_v1 = vld [vmem:[%s2216_s23 + $0x10] sm:$0xff]  ;;  %v1727_v4 = vld [vmem:[%s2216_s23 + $0x8] sm:$0xff]  ;;  %112 = vmatpush.msra.mxu1 %v85_v9  ;;  %222 = vmatpush.msrb.mxu0 %v1825_v50 }
   0x9   :  { %152 = vmatpush.msra.mxu2 %v1710_v0  ;;  %v1742_v8 = vld [vmem:[%s2216_s23] sm:$0xff]  ;;  %1465 = vmatmul.msk.f32.vlgmr.msra.gmra.mxu1 %vm93_vm0, %v1756_v11 }
   0xa   :  { %v1511_v17 = vld [vmem:[%s2203_s6] ss:$0 sm:$0xff]  ;;  %s1621_s6 = smov 32   ;;  %245 = vmatpush.msrb.mxu1 %v1808_v47  ;;  %223 = vmatpush.msrb.mxu0 %v1830_v51 }
   0xb   :  { %153 = vmatpush.msra.mxu2 %v1715_v1  ;;  %v1835_v52 = vld [vmem:[%s2205_s9] sm:$0xff]  ;;  %382 = vmatpush.msra.mxu3 %v1843_v53 }
   0xc   :  { %246 = vmatpush.msrb.mxu1 %v1814_v48  ;;  %v1852_v54 = vld [vmem:[%s2207_s8] sm:$0xff]  ;;  %224 = vmatpush.msrb.mxu0 %v1843_v53 }
   0xd   :  { %154 = vmatpush.msra.mxu2 %v1727_v4  ;;  %383 = vmatpush.msra.mxu3 %v1852_v54  ;;  %v1892_v62 = vld [vmem:[%s2206_s11] ss:$0 sm:$0xff] }
   0xe   :  { %247 = vmatpush.msrb.mxu1 %v1819_v49  ;;  %225 = vmatpush.msrb.mxu0 %v1852_v54  ;;  %v1905_v5 = vld [vmem:[%s2208_s10] ss:$0 sm:$0xff] }
   0xf   :  { %155 = vmatpush.msra.mxu2 %v1742_v8  ;;  %1464 = vmatmul.msk.f32.gmra.mxu0 %vm54_vm1, %v51_v13 }
  0x10   :  { %1466 = vmatmul.msk.f32.vlgmr.msra.gmra.mxu2 %vm93_vm0, %v1751_v10  ;;  %248 = vmatpush.msrb.mxu1 %v1835_v52 }
  0x11   :  { %311 = vmatpush.msrb.mxu2 %v1710_v0  ;;  %1469 = vmatmul.msk.f32.vlgmr.msrb.gmra.mxu1 %vm93_vm0, %v1756_v11 }
  0x12   :  { %467 = vmatpush.msra.mxu1 %v1710_v0  ;;  %405 = vmatpush.msra.mxu0 %v1808_v47 }
  0x13   :  { %312 = vmatpush.msrb.mxu2 %v1715_v1  ;;  %561 = vmatpush.msrb.mxu3 %v1808_v47 }
  0x14   :  { %468 = vmatpush.msra.mxu1 %v1715_v1  ;;  %406 = vmatpush.msra.mxu0 %v1814_v48 }
  0x15   :  { %313 = vmatpush.msrb.mxu2 %v1727_v4  ;;  %562 = vmatpush.msrb.mxu3 %v1814_v48 }
  0x16   :  { %469 = vmatpush.msra.mxu1 %v1727_v4  ;;  %407 = vmatpush.msra.mxu0 %v1819_v49 }
  0x17   :  { %314 = vmatpush.msrb.mxu2 %v1742_v8  ;;  %563 = vmatpush.msrb.mxu3 %v1819_v49 }
  0x18   :  { %470 = vmatpush.msra.mxu1 %v1742_v8  ;;  %408 = vmatpush.msra.mxu0 %v1835_v52 }
  0x19   :  { %536 = vmatpush.msra.mxu2 %v1825_v50  ;;  %564 = vmatpush.msrb.mxu3 %v1835_v52 }
  0x1a   :  { %692 = vmatpush.msrb.mxu1 %v1825_v50 }
  0x1b   :  { %537 = vmatpush.msra.mxu2 %v1830_v51 }
  0x1c   :  { %693 = vmatpush.msrb.mxu1 %v1830_v51 }
  0x1d   :  { %538 = vmatpush.msra.mxu2 %v1843_v53 }
  0x1e   :  { %694 = vmatpush.msrb.mxu1 %v1843_v53 }
  0x1f   :  { %539 = vmatpush.msra.mxu2 %v1852_v54 }
  0x20   :  { %695 = vmatpush.msrb.mxu1 %v1852_v54 }
  0x84   :  { %v78_v23 = vpop.f32.mrf.mxu0 }
  0x86   :  { %v114_v18 = vpop.f32.mrf.mxu1 }
  0x87   :  { %v1783_v19 = vadd.f32 %v1511_v17, %v114_v18 }
  0x89   :  { %v296_v20 = vrot.slane %v1783_v19, 6  ;;  %v452_v21 = vrot.slane %v1783_v19, 4  ;;  %v608_v22 = vrot.slane %v1783_v19, 2  ;;  %v133_v27 = vadd.f32 %v1783_v19, %v78_v23 }
  0x8b   :  { %v1790_v24 = vadd.f32 %v296_v20, %v78_v23  ;;  %v1794_v25 = vadd.f32 %v452_v21, %v78_v23  ;;  %v1798_v26 = vadd.f32 %v608_v22, %v78_v23 }
  0x8c   :  { %v1900_v3 = vpop.f32.mrf.mxu0 }
  0x8e   :  { %v250_v63 = vpop.f32.mrf.mxu1 }
  0x8f   :  { %v251_v2 = vadd.f32 %v1892_v62, %v250_v63 }
  0x93   :  { %v157_v15 = vpop.f32.mrf.mxu2 }
  0x94   :  { %v158_v16 = vadd.f32 %v1776_v14, %v157_v15 }
  0x96   :  { %181 = vrot.lane.b32.xlu0 %v158_v16, %s1619_s19  ;;  %v160_v28 = vadd.f32 %v158_v16, %v133_v27 }
  0x98   :  { %v1467_v29 = vmul.f32 -1.442695, %v160_v28 }
  0x9a   :  { %1516 = vpow2.f32 %v1467_v29 }
  0xa0   :  { %v1517_v30 = vpop.eup %1516 }
  0xa1   :  { %v164_v31 = vadd.f32 1.0, %v1517_v30 }
  0xa3   :  { %1518 = vrcp.f32 %v164_v31  ;;  %v176_v37 = vand.u32 2147483648, %v164_v31  ;;  %vm170_vm3 = vweird.f32 %v164_v31  ;;  %v174_v38 = vand.u32 2147483647, %v164_v31 }
  0xa5   :  { %v177_v40 = vor.u32 1.1754944e-38, %v176_v37  ;;  %vm175_vm5 = vcmp.eq.f32.partialorder %v174_v38, 8.507059e+37 }
  0xa9   :  { %v1519_v32 = vpop.eup %1518 }
  0xaa   :  { %v166_v33 = vmul.f32 %v1519_v32, %v164_v31  ;;  %vm171_vm2 = vweird.f32 %v1519_v32 }
  0xab   :  { %vm172_vm4 = vmor %vm170_vm3, %vm171_vm2 }
  0xac   :  { %v167_v34 = vsub.f32 1.0, %v166_v33 }
  0xae   :  { %v168_v35 = vmul.f32 %v1519_v32, %v167_v34 }
  0xb0   :  { %v169_v36 = vadd.f32 %v1519_v32, %v168_v35 }
  0xb2   :  { %v173_v39 = vsel %vm172_vm4, %v1519_v32, %v169_v36 }
  0xb3   :  { %v178_v42 = vsel %vm175_vm5, %v177_v40, %v173_v39 }
  0xb4   :  { %v191_v56 = vsub.f32 1.0, %v178_v42 }
 0x108   :  { %v182_v41 = vpop.permute.xlu0 %181 }
 0x109   :  { %v184_v43 = vmul.f32 %v182_v41, %v178_v42 }
 0x10b   :  { %186 = vrot.lane.b32.xlu0 %v184_v43, %s1619_s19 }
 0x113   :  { %274 = vrot.lane.b32.xlu0 %v251_v2, %s1619_s19 }
 0x17d   :  { %v187_v44 = vpop.permute.xlu0 %186 }
 0x17e   :  { %v189_v45 = vadd.f32 %v187_v44, %v133_v27 }
 0x180   :  { %1520 = vtanh.f32 %v189_v45 }
 0x185   :  { %v275_v37 = vpop.permute.xlu0 %274 }
 0x186   :  { %v1521_v46 = vpop.eup %1520 }
 0x187   :  { %193 = vrot.lane.b32.xlu1 %v1521_v46, %s1620_s0 }
 0x18f   :  { %197 = vrot.lane.b32.xlu1 %v1751_v10, %s1621_s6 }
 0x1f9   :  { %v194_v55 = vpop.permute.xlu1 %193 }
 0x1fa   :  { %v196_v58 = vmul.f32 %v194_v55, %v191_v56 }
 0x201   :  { %v198_v57 = vpop.permute.xlu1 %197 }
 0x202   :  { %v200_v59 = vmul.f32 %v198_v57, %v178_v42 }
 0x204   :  { %v1879_v60 = vadd.f32 %v200_v59, %v196_v58 }
 0x206   :  { %206 = vrot.lane.b32.xlu2 %v1879_v60, %s1620_s0  ;;  %v358_v57 = vrot.slane %v1879_v60, 6 }
 0x260   :  { %v207_v61 = vpop.permute.xlu2 %206 }
 0x261   :  { %1468 = vmatmul.msk.f32.vlgmr.msrb.gmra.mxu0 %vm93_vm0, %v207_v61  ;;  %1471 = vmatmul.msk.f32.vlgmr.msrb.gmra.mxu2 %vm93_vm0, %v207_v61 }
 0x262   :  { %623 = vmatpush.msrb.mxu0 %v1710_v0  ;;  %717 = vmatpush.msrb.mxu2 %v1808_v47 }
 0x264   :  { %624 = vmatpush.msrb.mxu0 %v1715_v1  ;;  %718 = vmatpush.msrb.mxu2 %v1814_v48 }
 0x266   :  { %625 = vmatpush.msrb.mxu0 %v1727_v4  ;;  %719 = vmatpush.msrb.mxu2 %v1819_v49 }
 0x268   :  { %626 = vmatpush.msrb.mxu0 %v1742_v8  ;;  %720 = vmatpush.msrb.mxu2 %v1835_v52 }
 0x2de   :  { %v227_v6 = vpop.f32.mrf.mxu0 }
 0x2df   :  { %v228_v7 = vadd.f32 %v1905_v5, %v227_v6 }
 0x2e1   :  { %v253_v9 = vadd.f32 %v251_v2, %v228_v7 }
 0x2e3   :  { %v1470_v10 = vmul.f32 -1.442695, %v253_v9 }
 0x2e4   :  { %v316_v12 = vpop.f32.mrf.mxu2 }
 0x2e5   :  { %1522 = vpow2.f32 %v1470_v10  ;;  %v317_v13 = vadd.f32 %v1776_v14, %v316_v12 }
 0x2e7   :  { %v320_v15 = vrot.slane %v317_v13, 6 }
 0x2e9   :  { %v322_v16 = vadd.f32 %v320_v15, %v1790_v24  ;;  %342 = vrot.lane.b32.xlu2 %v320_v15, %s1619_s19 }
 0x2eb   :  { %v1523_v17 = vpop.eup %1522  ;;  %v1472_v18 = vmul.f32 -1.442695, %v322_v16 }
 0x2ec   :  { %v257_v23 = vadd.f32 1.0, %v1523_v17 }
 0x2ed   :  { %1524 = vpow2.f32 %v1472_v18 }
 0x2ee   :  { %1526 = vrcp.f32 %v257_v23  ;;  %v269_v32 = vand.u32 2147483648, %v257_v23  ;;  %v267_v34 = vand.u32 2147483647, %v257_v23  ;;  %vm263_vm7 = vweird.f32 %v257_v23 }
 0x2f0   :  { %v270_v38 = vor.u32 1.1754944e-38, %v269_v32  ;;  %vm268_vm9 = vcmp.eq.f32.partialorder %v267_v34, 8.507059e+37 }
 0x2f3   :  { %v1525_v27 = vpop.eup %1524 }
 0x2f4   :  { %v1527_v28 = vpop.eup %1526  ;;  %v326_v29 = vadd.f32 1.0, %v1525_v27 }
 0x2f5   :  { %v259_v30 = vmul.f32 %v1527_v28, %v257_v23  ;;  %vm264_vm6 = vweird.f32 %v1527_v28 }
 0x2f6   :  { %1528 = vrcp.f32 %v326_v29  ;;  %vm265_vm8 = vmor %vm263_vm7, %vm264_vm6  ;;  %v338_v44 = vand.u32 2147483648, %v326_v29  ;;  %v336_v46 = vand.u32 2147483647, %v326_v29  ;;  %vm332_vm11 = vweird.f32 %v326_v29 }
 0x2f7   :  { %v260_v31 = vsub.f32 1.0, %v259_v30 }
 0x2f8   :  { %v339_v56 = vor.u32 1.1754944e-38, %v338_v44  ;;  %vm337_vm13 = vcmp.eq.f32.partialorder %v336_v46, 8.507059e+37 }
 0x2f9   :  { %v261_v33 = vmul.f32 %v1527_v28, %v260_v31 }
 0x2fb   :  { %v262_v35 = vadd.f32 %v1527_v28, %v261_v33 }
 0x2fc   :  { %v1529_v36 = vpop.eup %1528 }
 0x2fd   :  { %v266_v39 = vsel %vm265_vm8, %v1527_v28, %v262_v35  ;;  %v328_v40 = vmul.f32 %v1529_v36, %v326_v29  ;;  %vm333_vm10 = vweird.f32 %v1529_v36 }
 0x2fe   :  { %v271_v41 = vsel %vm268_vm9, %v270_v38, %v266_v39  ;;  %vm334_vm12 = vmor %vm332_vm11, %vm333_vm10 }
 0x2ff   :  { %v277_v42 = vmul.f32 %v275_v37, %v271_v41  ;;  %v329_v43 = vsub.f32 1.0, %v328_v40  ;;  %v284_v16 = vsub.f32 1.0, %v271_v41 }
 0x301   :  { %279 = vrot.lane.b32.xlu2 %v277_v42, %s1619_s19  ;;  %v330_v45 = vmul.f32 %v1529_v36, %v329_v43 }
 0x303   :  { %v331_v55 = vadd.f32 %v1529_v36, %v330_v45 }
 0x305   :  { %v335_v58 = vsel %vm334_vm12, %v1529_v36, %v331_v55 }
 0x306   :  { %v340_v59 = vsel %vm337_vm13, %v339_v56, %v335_v58 }
 0x307   :  { %v360_v61 = vmul.f32 %v358_v57, %v340_v59 }
 0x309   :  { %290 = vrot.lane.b32.xlu2 %v1756_v11, %s1621_s6 }
 0x343   :  { %v343_v63 = vpop.permute.xlu2 %342 }
 0x344   :  { %v345_v2 = vmul.f32 %v343_v63, %v340_v59 }
 0x346   :  { %347 = vrot.lane.b32.xlu1 %v345_v2, %s1619_s19 }
 0x35b   :  { %v280_v6 = vpop.permute.xlu2 %279 }
 0x35c   :  { %v282_v9 = vadd.f32 %v280_v6, %v228_v7  ;;  %v352_v7 = vsub.f32 1.0, %v340_v59 }
 0x35e   :  { %1530 = vtanh.f32 %v282_v9 }
 0x363   :  { %v291_v15 = vpop.permute.xlu2 %290 }
 0x364   :  { %v1531_v10 = vpop.eup %1530  ;;  %v293_v17 = vmul.f32 %v291_v15, %v271_v41 }
 0x365   :  { %286 = vrot.lane.b32.xlu1 %v1531_v10, %s1620_s0 }
 0x3b8   :  { %v348_v12 = vpop.permute.xlu1 %347 }
 0x3b9   :  { %v350_v60 = vadd.f32 %v348_v12, %v1790_v24 }
 0x3bb   :  { %1532 = vtanh.f32 %v350_v60 }
 0x3c1   :  { %v1533_v13 = vpop.eup %1532 }
 0x3c2   :  { %354 = vrot.lane.b32.xlu0 %v1533_v13, %s1620_s0 }
 0x3d7   :  { %v287_v11 = vpop.permute.xlu1 %286 }
 0x3d8   :  { %v289_v18 = vmul.f32 %v287_v11, %v284_v16 }
 0x3da   :  { %v1919_v23 = vadd.f32 %v293_v17, %v289_v18 }
 0x3dc   :  { %389 = vrot.lane.b32.xlu1 %v1919_v23, %s1620_s0 }
 0x434   :  { %v355_v27 = vpop.permute.xlu0 %354 }
 0x435   :  { %v357_v28 = vmul.f32 %v355_v27, %v352_v7 }
 0x437   :  { %v1923_v29 = vadd.f32 %v360_v61, %v357_v28 }
 0x439   :  { %v363_v24 = vrot.slane %v1923_v29, 2  ;;  %v514_v10 = vrot.slane %v1923_v29, 6 }
 0x43b   :  { %364 = vrot.lane.b32.xlu0 %v363_v24, %s1620_s0 }
 0x44e   :  { %v390_v30 = vpop.permute.xlu1 %389 }
 0x44f   :  { %1474 = vmatmul.msk.f32.vlgmr.msra.gmra.mxu0 %vm93_vm0, %v390_v30 }
 0x450   :  { %842 = vmatpush.msra.mxu0 %v1825_v50 }
 0x452   :  { %843 = vmatpush.msra.mxu0 %v1830_v51 }
 0x454   :  { %844 = vmatpush.msra.mxu0 %v1843_v53 }
 0x456   :  { %845 = vmatpush.msra.mxu0 %v1852_v54 }
 0x4ad   :  { %v365_v31 = vpop.permute.xlu0 %364 }
 0x4ae   :  { %1473 = vmatmul.msk.f32.vlgmr.msra.gmra.mxu3 %vm93_vm0, %v365_v31  ;;  %1476 = vmatmul.msk.f32.vlgmr.msra.gmra.mxu1 %vm93_vm0, %v365_v31 }
 0x4af   :  { %777 = vmatpush.msra.mxu3 %v1710_v0  ;;  %867 = vmatpush.msra.mxu1 %v1808_v47 }
 0x4b1   :  { %778 = vmatpush.msra.mxu3 %v1715_v1  ;;  %868 = vmatpush.msra.mxu1 %v1814_v48 }
 0x4b3   :  { %779 = vmatpush.msra.mxu3 %v1727_v4  ;;  %869 = vmatpush.msra.mxu1 %v1819_v49 }
 0x4b5   :  { %780 = vmatpush.msra.mxu3 %v1742_v8  ;;  %870 = vmatpush.msra.mxu1 %v1835_v52 }
 0x4cc   :  { %v410_v32 = vpop.f32.mrf.mxu0 }
 0x4cd   :  { %v411_v33 = vadd.f32 %v1892_v62, %v410_v32 }
 0x4cf   :  { %434 = vrot.lane.b32.xlu0 %v411_v33, %s1619_s19 }
 0x52b   :  { %v472_v34 = vpop.f32.mrf.mxu1 }
 0x52c   :  { %v473_v35 = vadd.f32 %v1776_v14, %v472_v34 }
 0x52e   :  { %v476_v36 = vrot.slane %v473_v35, 4 }
 0x530   :  { %v478_v37 = vadd.f32 %v476_v36, %v1794_v25  ;;  %498 = vrot.lane.b32.xlu2 %v476_v36, %s1619_s19 }
 0x531   :  { %v385_v38 = vpop.f32.mrf.mxu3 }
 0x532   :  { %v1477_v39 = vmul.f32 -1.442695, %v478_v37  ;;  %v386_v40 = vadd.f32 %v1905_v5, %v385_v38 }
 0x534   :  { %1534 = vpow2.f32 %v1477_v39  ;;  %v413_v41 = vadd.f32 %v411_v33, %v386_v40 }
 0x536   :  { %v1475_v42 = vmul.f32 -1.442695, %v413_v41 }
 0x538   :  { %1536 = vpow2.f32 %v1475_v42 }
 0x53a   :  { %v1535_v43 = vpop.eup %1534 }
 0x53b   :  { %v482_v44 = vadd.f32 1.0, %v1535_v43 }
 0x53d   :  { %1538 = vrcp.f32 %v482_v44  ;;  %v492_v59 = vand.u32 2147483647, %v482_v44  ;;  %v494_v61 = vand.u32 2147483648, %v482_v44  ;;  %vm488_vm15 = vweird.f32 %v482_v44 }
 0x53e   :  { %v1537_v45 = vpop.eup %1536 }
 0x53f   :  { %v417_v46 = vadd.f32 1.0, %v1537_v45  ;;  %vm493_vm2 = vcmp.eq.f32.partialorder %v492_v59, 8.507059e+37  ;;  %v495_v60 = vor.u32 1.1754944e-38, %v494_v61 }
 0x541   :  { %1540 = vrcp.f32 %v417_v46  ;;  %v429_v12 = vand.u32 2147483648, %v417_v46  ;;  %v427_v15 = vand.u32 2147483647, %v417_v46  ;;  %vm423_vm4 = vweird.f32 %v417_v46  ;;  %v435_v28 = vpop.permute.xlu0 %434 }
 0x543   :  { %v1539_v55 = vpop.eup %1538  ;;  %v430_v7 = vor.u32 1.1754944e-38, %v429_v12  ;;  %vm428_vm6 = vcmp.eq.f32.partialorder %v427_v15, 8.507059e+37 }
 0x544   :  { %v484_v56 = vmul.f32 %v1539_v55, %v482_v44  ;;  %vm489_vm14 = vweird.f32 %v1539_v55 }
 0x545   :  { %vm490_vm1 = vmor %vm488_vm15, %vm489_vm14 }
 0x546   :  { %v485_v57 = vsub.f32 1.0, %v484_v56 }
 0x547   :  { %v1541_v58 = vpop.eup %1540 }
 0x548   :  { %v419_v63 = vmul.f32 %v1541_v58, %v417_v46  ;;  %v486_v2 = vmul.f32 %v1539_v55, %v485_v57  ;;  %vm424_vm3 = vweird.f32 %v1541_v58 }
 0x549   :  { %vm425_vm5 = vmor %vm423_vm4, %vm424_vm3 }
 0x54a   :  { %v420_v6 = vsub.f32 1.0, %v419_v63  ;;  %v487_v9 = vadd.f32 %v1539_v55, %v486_v2 }
 0x54c   :  { %v421_v13 = vmul.f32 %v1541_v58, %v420_v6  ;;  %v491_v16 = vsel %vm490_vm1, %v1539_v55, %v487_v9 }
 0x54d   :  { %v496_v11 = vsel %vm493_vm2, %v495_v60, %v491_v16 }
 0x54e   :  { %v422_v17 = vadd.f32 %v1541_v58, %v421_v13  ;;  %v516_v18 = vmul.f32 %v514_v10, %v496_v11 }
 0x550   :  { %v426_v27 = vsel %vm425_vm5, %v1541_v58, %v422_v17 }
 0x551   :  { %v431_v24 = vsel %vm428_vm6, %v430_v7, %v426_v27 }
 0x552   :  { %v437_v30 = vmul.f32 %v435_v28, %v431_v24  ;;  %v444_v38 = vsub.f32 1.0, %v431_v24  ;;  %v450_v41 = vmul.f32 %v431_v24, %v1919_v23 }
 0x554   :  { %439 = vrot.lane.b32.xlu2 %v437_v30, %s1619_s19 }
 0x58a   :  { %v499_v29 = vpop.permute.xlu2 %498 }
 0x58b   :  { %v501_v31 = vmul.f32 %v499_v29, %v496_v11 }
 0x58d   :  { %503 = vrot.lane.b32.xlu1 %v501_v31, %s1619_s19 }
 0x5ae   :  { %v440_v32 = vpop.permute.xlu2 %439 }
 0x5af   :  { %v442_v33 = vadd.f32 %v440_v32, %v386_v40  ;;  %v508_v40 = vsub.f32 1.0, %v496_v11 }
 0x5b1   :  { %1542 = vtanh.f32 %v442_v33 }
 0x5b7   :  { %v1543_v34 = vpop.eup %1542 }
 0x5b8   :  { %446 = vrot.lane.b32.xlu1 %v1543_v34, %s1620_s0 }
 0x5ff   :  { %v504_v35 = vpop.permute.xlu1 %503 }
 0x600   :  { %v506_v36 = vadd.f32 %v504_v35, %v1794_v25 }
 0x602   :  { %1544 = vtanh.f32 %v506_v36 }
 0x608   :  { %v1545_v37 = vpop.eup %1544 }
 0x609   :  { %510 = vrot.lane.b32.xlu0 %v1545_v37, %s1620_s0 }
 0x62a   :  { %v447_v39 = vpop.permute.xlu1 %446 }
 0x62b   :  { %v449_v42 = vmul.f32 %v447_v39, %v444_v38 }
 0x62d   :  { %v1955_v43 = vadd.f32 %v450_v41, %v449_v42 }
 0x62f   :  { %545 = vrot.lane.b32.xlu0 %v1955_v43, %s1620_s0 }
 0x67b   :  { %v511_v44 = vpop.permute.xlu0 %510 }
 0x67c   :  { %v513_v45 = vmul.f32 %v511_v44, %v508_v40 }
 0x67e   :  { %v1959_v46 = vadd.f32 %v516_v18, %v513_v45 }
 0x680   :  { %v519_v25 = vrot.slane %v1959_v46, 4 }
 0x682   :  { %520 = vrot.lane.b32.xlu2 %v519_v25, %s1620_s0 }
 0x6a1   :  { %v546_v55 = vpop.permute.xlu0 %545 }
 0x6a2   :  { %1479 = vmatmul.msk.f32.vlgmr.msrb.gmra.mxu3 %vm93_vm0, %v546_v55 }
 0x6a3   :  { %996 = vmatpush.msrb.mxu3 %v1825_v50 }
 0x6a5   :  { %997 = vmatpush.msrb.mxu3 %v1830_v51 }
 0x6a7   :  { %998 = vmatpush.msrb.mxu3 %v1843_v53 }
 0x6a9   :  { %999 = vmatpush.msrb.mxu3 %v1852_v54 }
 0x6dc   :  { %v521_v56 = vpop.permute.xlu2 %520 }
 0x6dd   :  { %1478 = vmatmul.msk.f32.vlgmr.msra.gmra.mxu2 %vm93_vm0, %v521_v56  ;;  %1481 = vmatmul.msk.f32.vlgmr.msrb.gmra.mxu0 %vm93_vm0, %v521_v56 }
 0x6de   :  { %927 = vmatpush.msra.mxu2 %v1710_v0  ;;  %1021 = vmatpush.msrb.mxu0 %v1808_v47 }
 0x6e0   :  { %928 = vmatpush.msra.mxu2 %v1715_v1  ;;  %1022 = vmatpush.msrb.mxu0 %v1814_v48 }
 0x6e2   :  { %929 = vmatpush.msra.mxu2 %v1727_v4  ;;  %1023 = vmatpush.msrb.mxu0 %v1819_v49 }
 0x6e4   :  { %930 = vmatpush.msra.mxu2 %v1742_v8  ;;  %1024 = vmatpush.msrb.mxu0 %v1835_v52 }
 0x725   :  { %v566_v57 = vpop.f32.mrf.mxu3 }
 0x726   :  { %v567_v58 = vadd.f32 %v1892_v62, %v566_v57 }
 0x728   :  { %590 = vrot.lane.b32.xlu2 %v567_v58, %s1619_s19 }
 0x75a   :  { %v628_v59 = vpop.f32.mrf.mxu0 }
 0x75b   :  { %v629_v61 = vadd.f32 %v1776_v14, %v628_v59 }
 0x75d   :  { %v632_v63 = vrot.slane %v629_v61, 2 }
 0x75f   :  { %654 = vrot.lane.b32.xlu1 %v632_v63, %s1619_s19  ;;  %v634_v31 = vadd.f32 %v632_v63, %v1798_v26 }
 0x760   :  { %v541_v2 = vpop.f32.mrf.mxu2 }
 0x761   :  { %v542_v6 = vadd.f32 %v1905_v5, %v541_v2  ;;  %v1482_v32 = vmul.f32 -1.442695, %v634_v31 }
 0x763   :  { %v569_v9 = vadd.f32 %v567_v58, %v542_v6 }
 0x765   :  { %v1480_v10 = vmul.f32 -1.442695, %v569_v9 }
 0x767   :  { %1546 = vpow2.f32 %v1480_v10 }
 0x76d   :  { %v1547_v12 = vpop.eup %1546 }
 0x76e   :  { %v573_v60 = vadd.f32 1.0, %v1547_v12 }
 0x770   :  { %1548 = vrcp.f32 %v573_v60  ;;  %v585_v17 = vand.u32 2147483648, %v573_v60  ;;  %vm579_vm8 = vweird.f32 %v573_v60  ;;  %v583_v7 = vand.u32 2147483647, %v573_v60 }
 0x771   :  { %1550 = vpow2.f32 %v1482_v32 }
 0x772   :  { %v586_v28 = vor.u32 1.1754944e-38, %v585_v17  ;;  %vm584_vm10 = vcmp.eq.f32.partialorder %v583_v7, 8.507059e+37 }
 0x776   :  { %v1549_v13 = vpop.eup %1548 }
 0x777   :  { %v575_v15 = vmul.f32 %v1549_v13, %v573_v60  ;;  %vm580_vm7 = vweird.f32 %v1549_v13  ;;  %v1551_v33 = vpop.eup %1550 }
 0x778   :  { %vm581_vm9 = vmor %vm579_vm8, %vm580_vm7  ;;  %v638_v34 = vadd.f32 1.0, %v1551_v33 }
 0x779   :  { %v576_v16 = vsub.f32 1.0, %v575_v15 }
 0x77a   :  { %1552 = vrcp.f32 %v638_v34  ;;  %v650_v41 = vand.u32 2147483648, %v638_v34  ;;  %vm644_vm12 = vweird.f32 %v638_v34  ;;  %v648_v42 = vand.u32 2147483647, %v638_v34 }
 0x77b   :  { %v577_v11 = vmul.f32 %v1549_v13, %v576_v16 }
 0x77c   :  { %v651_v44 = vor.u32 1.1754944e-38, %v650_v41  ;;  %vm649_vm14 = vcmp.eq.f32.partialorder %v648_v42, 8.507059e+37 }
 0x77d   :  { %v578_v18 = vadd.f32 %v1549_v13, %v577_v11 }
 0x77f   :  { %v582_v27 = vsel %vm581_vm9, %v1549_v13, %v578_v18 }
 0x780   :  { %v587_v24 = vsel %vm584_vm10, %v586_v28, %v582_v27  ;;  %v1553_v35 = vpop.eup %1552 }
 0x781   :  { %v640_v36 = vmul.f32 %v1553_v35, %v638_v34  ;;  %vm645_vm11 = vweird.f32 %v1553_v35  ;;  %v600_v2 = vsub.f32 1.0, %v587_v24  ;;  %v606_v10 = vmul.f32 %v587_v24, %v1955_v43 }
 0x782   :  { %v591_v30 = vpop.permute.xlu2 %590  ;;  %vm646_vm13 = vmor %vm644_vm12, %vm645_vm11 }
 0x783   :  { %v593_v29 = vmul.f32 %v591_v30, %v587_v24  ;;  %v641_v37 = vsub.f32 1.0, %v640_v36 }
 0x785   :  { %595 = vrot.lane.b32.xlu1 %v593_v29, %s1619_s19  ;;  %v642_v38 = vmul.f32 %v1553_v35, %v641_v37 }
 0x787   :  { %v643_v39 = vadd.f32 %v1553_v35, %v642_v38 }
 0x789   :  { %v647_v40 = vsel %vm646_vm13, %v1553_v35, %v643_v39 }
 0x78a   :  { %v652_v25 = vsel %vm649_vm14, %v651_v44, %v647_v40  ;;  %v764_v44 = vadd.f32 %v1783_v19, %v1900_v3 }
 0x78b   :  { %v664_v13 = vsub.f32 1.0, %v652_v25 }
 0x7d1   :  { %v655_v45 = vpop.permute.xlu1 %654 }
 0x7d2   :  { %v657_v55 = vmul.f32 %v655_v45, %v652_v25 }
 0x7d4   :  { %659 = vrot.lane.b32.xlu0 %v657_v55, %s1619_s19 }
 0x7f7   :  { %v596_v56 = vpop.permute.xlu1 %595 }
 0x7f8   :  { %v598_v57 = vadd.f32 %v596_v56, %v542_v6  ;;  %v670_v6 = vrot.slane %v1959_v46, 6 }
 0x7fa   :  { %1554 = vtanh.f32 %v598_v57  ;;  %v672_v16 = vmul.f32 %v670_v6, %v652_v25 }
 0x800   :  { %v1555_v58 = vpop.eup %1554 }
 0x801   :  { %602 = vrot.lane.b32.xlu0 %v1555_v58, %s1620_s0 }
 0x846   :  { %v660_v59 = vpop.permute.xlu0 %659 }
 0x847   :  { %v662_v61 = vadd.f32 %v660_v59, %v1798_v26 }
 0x849   :  { %1556 = vtanh.f32 %v662_v61 }
 0x84f   :  { %v1557_v63 = vpop.eup %1556 }
 0x850   :  { %666 = vrot.lane.b32.xlu2 %v1557_v63, %s1620_s0 }
 0x873   :  { %v603_v9 = vpop.permute.xlu0 %602 }
 0x874   :  { %v605_v12 = vmul.f32 %v603_v9, %v600_v2 }
 0x876   :  { %v1990_v60 = vadd.f32 %v606_v10, %v605_v12 }
 0x878   :  { %701 = vrot.lane.b32.xlu2 %v1990_v60, %s1620_s0 }
 0x8aa   :  { %v667_v15 = vpop.permute.xlu2 %666 }
 0x8ab   :  { %v669_v26 = vmul.f32 %v667_v15, %v664_v13 }
 0x8ad   :  { %v1995_v11 = vadd.f32 %v672_v16, %v669_v26 }
 0x8af   :  { %v675_v17 = vrot.slane %v1995_v11, 6  ;;  %v1612_v11 = vld [vmem:[%s2216_s23 + $0x18] sm:$0xff] }
 0x8b1   :  { %676 = vrot.lane.b32.xlu1 %v675_v17, %s1620_s0 }
 0x8d2   :  { %v702_v18 = vpop.permute.xlu2 %701 }
 0x8d3   :  { %1484 = vmatmul.msk.f32.vlgmr.msrb.gmra.mxu2 %vm93_vm0, %v702_v18 }
 0x8d4   :  { %1150 = vmatpush.msrb.mxu2 %v1825_v50 }
 0x8d6   :  { %1151 = vmatpush.msrb.mxu2 %v1830_v51 }
 0x8d8   :  { %1152 = vmatpush.msrb.mxu2 %v1843_v53 }
 0x8da   :  { %1153 = vmatpush.msrb.mxu2 %v1852_v54 }
 0x923   :  { %v677_v46 = vpop.permute.xlu1 %676 }
 0x924   :  { %1483 = vmatmul.msk.f32.vlgmr.msrb.gmra.mxu1 %vm93_vm0, %v677_v46  ;;  %1486 = vmatmul.msk.f32.vlgmr.msra.gmra.mxu3 %vm93_vm0, %v677_v46 }
 0x925   :  { %1081 = vmatpush.msrb.mxu1 %v1710_v0  ;;  %1175 = vmatpush.msra.mxu3 %v1808_v47 }
 0x927   :  { %1082 = vmatpush.msrb.mxu1 %v1715_v1  ;;  %1176 = vmatpush.msra.mxu3 %v1814_v48 }
 0x929   :  { %1083 = vmatpush.msrb.mxu1 %v1727_v4  ;;  %1177 = vmatpush.msra.mxu3 %v1819_v49 }
 0x92b   :  { %1084 = vmatpush.msrb.mxu1 %v1742_v8  ;;  %1178 = vmatpush.msra.mxu3 %v1835_v52 }
 0x956   :  { %v722_v7 = vpop.f32.mrf.mxu2 }
 0x957   :  { %v723_v27 = vadd.f32 %v1892_v62, %v722_v7 }
 0x959   :  { %746 = vrot.lane.b32.xlu1 %v723_v27, %s1619_s19 }
 0x9a1   :  { %v697_v0 = vpop.f32.mrf.mxu1 }
 0x9a2   :  { %v698_v28 = vadd.f32 %v1905_v5, %v697_v0 }
 0x9a4   :  { %v725_v24 = vadd.f32 %v723_v27, %v698_v28 }
 0x9a6   :  { %v1485_v1 = vmul.f32 -1.442695, %v725_v24 }
 0x9a7   :  { %v782_v30 = vpop.f32.mrf.mxu3 }
 0x9a8   :  { %1558 = vpow2.f32 %v1485_v1  ;;  %v783_v4 = vadd.f32 %v1776_v14, %v782_v30 }
 0x9aa   :  { %806 = vrot.lane.b32.xlu0 %v783_v4, %s1619_s19  ;;  %v785_v45 = vadd.f32 %v783_v4, %v764_v44 }
 0x9ac   :  { %v1487_v25 = vmul.f32 -1.442695, %v785_v45 }
 0x9ae   :  { %v1559_v29 = vpop.eup %1558 }
 0x9af   :  { %v729_v8 = vadd.f32 1.0, %v1559_v29 }
 0x9b1   :  { %1560 = vrcp.f32 %v729_v8  ;;  %v741_v36 = vand.u32 2147483648, %v729_v8  ;;  %vm735_vm1 = vweird.f32 %v729_v8  ;;  %v739_v37 = vand.u32 2147483647, %v729_v8 }
 0x9b2   :  { %1562 = vpow2.f32 %v1487_v25 }
 0x9b3   :  { %v742_v39 = vor.u32 1.1754944e-38, %v741_v36  ;;  %vm740_vm3 = vcmp.eq.f32.partialorder %v739_v37, 8.507059e+37 }
 0x9b7   :  { %v1561_v31 = vpop.eup %1560 }
 0x9b8   :  { %v731_v32 = vmul.f32 %v1561_v31, %v729_v8  ;;  %vm736_vm15 = vweird.f32 %v1561_v31  ;;  %v1563_v55 = vpop.eup %1562 }
 0x9b9   :  { %vm737_vm2 = vmor %vm735_vm1, %vm736_vm15  ;;  %v789_v56 = vadd.f32 1.0, %v1563_v55 }
 0x9ba   :  { %v732_v33 = vsub.f32 1.0, %v731_v32 }
 0x9bb   :  { %1564 = vrcp.f32 %v789_v56  ;;  %v801_v2 = vand.u32 2147483648, %v789_v56  ;;  %vm795_vm5 = vweird.f32 %v789_v56  ;;  %v799_v9 = vand.u32 2147483647, %v789_v56 }
 0x9bc   :  { %v733_v34 = vmul.f32 %v1561_v31, %v732_v33 }
 0x9bd   :  { %v802_v12 = vor.u32 1.1754944e-38, %v801_v2  ;;  %vm800_vm7 = vcmp.eq.f32.partialorder %v799_v9, 8.507059e+37 }
 0x9be   :  { %v734_v35 = vadd.f32 %v1561_v31, %v733_v34 }
 0x9c0   :  { %v738_v38 = vsel %vm737_vm2, %v1561_v31, %v734_v35 }
 0x9c1   :  { %v743_v42 = vsel %vm740_vm3, %v742_v39, %v738_v38  ;;  %v1565_v57 = vpop.eup %1564 }
 0x9c2   :  { %v791_v58 = vmul.f32 %v1565_v57, %v789_v56  ;;  %vm796_vm4 = vweird.f32 %v1565_v57  ;;  %v756_v0 = vsub.f32 1.0, %v743_v42  ;;  %v762_v1 = vmul.f32 %v743_v42, %v1990_v60 }
 0x9c3   :  { %vm797_vm6 = vmor %vm795_vm5, %vm796_vm4 }
 0x9c4   :  { %v792_v59 = vsub.f32 1.0, %v791_v58 }
 0x9c6   :  { %v793_v61 = vmul.f32 %v1565_v57, %v792_v59 }
 0x9c8   :  { %v794_v63 = vadd.f32 %v1565_v57, %v793_v61  ;;  %v914_v61 = vadd.f32 %v296_v20, %v1900_v3 }
 0x9ca   :  { %v798_v10 = vsel %vm797_vm6, %v1565_v57, %v794_v63 }
 0x9cb   :  { %v747_v41 = vpop.permute.xlu1 %746  ;;  %v803_v13 = vsel %vm800_vm7, %v802_v12, %v798_v10 }
 0x9cc   :  { %v749_v40 = vmul.f32 %v747_v41, %v743_v42  ;;  %v823_v8 = vmul.f32 %v803_v13, %v675_v17 }
 0x9ce   :  { %751 = vrot.lane.b32.xlu0 %v749_v40, %s1619_s19 }
 0xa1c   :  { %v807_v6 = vpop.permute.xlu0 %806 }
 0xa1d   :  { %v809_v15 = vmul.f32 %v807_v6, %v803_v13 }
 0xa1f   :  { %811 = vrot.lane.b32.xlu2 %v809_v15, %s1619_s19 }
 0xa40   :  { %v752_v16 = vpop.permute.xlu0 %751 }
 0xa41   :  { %v754_v26 = vadd.f32 %v752_v16, %v698_v28  ;;  %v816_v28 = vsub.f32 1.0, %v803_v13 }
 0xa43   :  { %1566 = vtanh.f32 %v754_v26 }
 0xa49   :  { %v1567_v18 = vpop.eup %1566 }
 0xa4a   :  { %758 = vrot.lane.b32.xlu2 %v1567_v18, %s1620_s0 }
 0xa79   :  { %v812_v46 = vpop.permute.xlu2 %811 }
 0xa7a   :  { %v814_v7 = vadd.f32 %v812_v46, %v764_v44 }
 0xa7c   :  { %1568 = vtanh.f32 %v814_v7 }
 0xa82   :  { %v1569_v27 = vpop.eup %1568 }
 0xa83   :  { %818 = vrot.lane.b32.xlu1 %v1569_v27, %s1620_s0 }
 0xaa4   :  { %v759_v24 = vpop.permute.xlu2 %758 }
 0xaa5   :  { %v761_v30 = vmul.f32 %v759_v24, %v756_v0 }
 0xaa7   :  { %v2028_v4 = vadd.f32 %v762_v1, %v761_v30 }
 0xaa9   :  { %851 = vrot.lane.b32.xlu1 %v2028_v4, %s1620_s0 }
 0xaf5   :  { %v819_v29 = vpop.permute.xlu1 %818 }
 0xaf6   :  { %v821_v31 = vmul.f32 %v819_v29, %v816_v28 }
 0xaf8   :  { %v2034_v32 = vadd.f32 %v823_v8, %v821_v31 }
 0xafa   :  { %826 = vrot.lane.b32.xlu0 %v2034_v32, %s1620_s0 }
 0xb1b   :  { %v852_v33 = vpop.permute.xlu1 %851 }
 0xb1c   :  { %1489 = vmatmul.msk.f32.vlgmr.msra.gmra.mxu1 %vm93_vm0, %v852_v33 }
 0xb1d   :  { %1304 = vmatpush.msra.mxu1 %v1825_v50  ;;  %v1613_v50 = vld [vmem:[%s2216_s23 + $0x10] sm:$0xff] }
 0xb1f   :  { %1305 = vmatpush.msra.mxu1 %v1830_v51  ;;  %v1614_v51 = vld [vmem:[%s2216_s23 + $0x8] sm:$0xff] }
 0xb21   :  { %1306 = vmatpush.msra.mxu1 %v1843_v53  ;;  %v1615_v53 = vld [vmem:[%s2216_s23] sm:$0xff] }
 0xb23   :  { %1307 = vmatpush.msra.mxu1 %v1852_v54 }
 0xb6c   :  { %v827_v34 = vpop.permute.xlu0 %826 }
 0xb6d   :  { %1488 = vmatmul.msk.f32.vlgmr.msra.gmra.mxu0 %vm93_vm0, %v827_v34  ;;  %1491 = vmatmul.msk.f32.vlgmr.msra.gmra.mxu2 %vm93_vm0, %v827_v34 }
 0xb6e   :  { %1235 = vmatpush.msra.mxu0 %v1612_v11  ;;  %1329 = vmatpush.msra.mxu2 %v1808_v47 }
 0xb70   :  { %1236 = vmatpush.msra.mxu0 %v1613_v50  ;;  %1330 = vmatpush.msra.mxu2 %v1814_v48 }
 0xb72   :  { %1237 = vmatpush.msra.mxu0 %v1614_v51  ;;  %1331 = vmatpush.msra.mxu2 %v1819_v49  ;;  %v974_v51 = vrot.slane %v2034_v32, 6 }
 0xb74   :  { %1238 = vmatpush.msra.mxu0 %v1615_v53  ;;  %1332 = vmatpush.msra.mxu2 %v1835_v52 }
 0xb99   :  { %v872_v47 = vpop.f32.mrf.mxu1 }
 0xb9a   :  { %v873_v54 = vadd.f32 %v1892_v62, %v872_v47 }
 0xb9c   :  { %896 = vrot.lane.b32.xlu2 %v873_v54, %s1619_s19 }
 0xbea   :  { %v847_v48 = vpop.f32.mrf.mxu0 }
 0xbeb   :  { %v848_v17 = vadd.f32 %v1905_v5, %v847_v48 }
 0xbed   :  { %v875_v35 = vadd.f32 %v873_v54, %v848_v17 }
 0xbef   :  { %v1490_v36 = vmul.f32 -1.442695, %v875_v35 }
 0xbf0   :  { %v932_v37 = vpop.f32.mrf.mxu2 }
 0xbf1   :  { %1570 = vpow2.f32 %v1490_v36  ;;  %v933_v49 = vadd.f32 %v1776_v14, %v932_v37 }
 0xbf3   :  { %v936_v38 = vrot.slane %v933_v49, 6 }
 0xbf5   :  { %958 = vrot.lane.b32.xlu0 %v936_v38, %s1619_s19  ;;  %v938_v63 = vadd.f32 %v936_v38, %v914_v61 }
 0xbf6   :  { %v897_v14 = vpop.permute.xlu2 %896 }
 0xbf7   :  { %v1571_v39 = vpop.eup %1570  ;;  %v1492_v2 = vmul.f32 -1.442695, %v938_v63 }
 0xbf8   :  { %v879_v41 = vadd.f32 1.0, %v1571_v39  ;;  %v2088_v39 = vld [vmem:[%s2204_s7] ss:$0 sm:$0xff] }
 0xbfa   :  { %1572 = vrcp.f32 %v879_v41  ;;  %v891_v44 = vand.u32 2147483648, %v879_v41  ;;  %v889_v25 = vand.u32 2147483647, %v879_v41  ;;  %vm885_vm9 = vweird.f32 %v879_v41 }
 0xbfb   :  { %1574 = vpow2.f32 %v1492_v2 }
 0xbfc   :  { %v892_v56 = vor.u32 1.1754944e-38, %v891_v44  ;;  %vm890_vm11 = vcmp.eq.f32.partialorder %v889_v25, 8.507059e+37 }
 0xc00   :  { %v1573_v52 = vpop.eup %1572 }
 0xc01   :  { %v881_v42 = vmul.f32 %v1573_v52, %v879_v41  ;;  %vm886_vm8 = vweird.f32 %v1573_v52  ;;  %v1575_v9 = vpop.eup %1574 }
 0xc02   :  { %vm887_vm10 = vmor %vm885_vm9, %vm886_vm8  ;;  %v942_v10 = vadd.f32 1.0, %v1575_v9 }
 0xc03   :  { %v882_v40 = vsub.f32 1.0, %v881_v42 }
 0xc04   :  { %1576 = vrcp.f32 %v942_v10  ;;  %v954_v26 = vand.u32 2147483648, %v942_v10  ;;  %vm948_vm13 = vweird.f32 %v942_v10  ;;  %v952_v18 = vand.u32 2147483647, %v942_v10 }
 0xc05   :  { %v883_v45 = vmul.f32 %v1573_v52, %v882_v40 }
 0xc06   :  { %v955_v7 = vor.u32 1.1754944e-38, %v954_v26  ;;  %vm953_vm15 = vcmp.eq.f32.partialorder %v952_v18, 8.507059e+37 }
 0xc07   :  { %v884_v55 = vadd.f32 %v1573_v52, %v883_v45 }
 0xc09   :  { %v888_v57 = vsel %vm887_vm10, %v1573_v52, %v884_v55  ;;  %v1068_v52 = vadd.f32 %v452_v21, %v1900_v3 }
 0xc0a   :  { %v893_v58 = vsel %vm890_vm11, %v892_v56, %v888_v57  ;;  %v1577_v12 = vpop.eup %1576 }
 0xc0b   :  { %v899_v59 = vmul.f32 %v897_v14, %v893_v58  ;;  %v944_v6 = vmul.f32 %v1577_v12, %v942_v10  ;;  %vm949_vm12 = vweird.f32 %v1577_v12  ;;  %v906_v31 = vsub.f32 1.0, %v893_v58 }
 0xc0c   :  { %vm950_vm14 = vmor %vm948_vm13, %vm949_vm12  ;;  %v912_v34 = vmul.f32 %v893_v58, %v2028_v4 }
 0xc0d   :  { %901 = vrot.lane.b32.xlu1 %v899_v59, %s1619_s19  ;;  %v945_v13 = vsub.f32 1.0, %v944_v6 }
 0xc0f   :  { %v946_v15 = vmul.f32 %v1577_v12, %v945_v13 }
 0xc11   :  { %v947_v16 = vadd.f32 %v1577_v12, %v946_v15 }
 0xc13   :  { %v951_v46 = vsel %vm950_vm14, %v1577_v12, %v947_v16 }
 0xc14   :  { %v956_v27 = vsel %vm953_vm15, %v955_v7, %v951_v46 }
 0xc15   :  { %v968_v53 = vsub.f32 1.0, %v956_v27  ;;  %v976_v54 = vmul.f32 %v974_v51, %v956_v27 }
 0xc67   :  { %v959_v20 = vpop.permute.xlu0 %958 }
 0xc68   :  { %v961_v0 = vmul.f32 %v959_v20, %v956_v27 }
 0xc6a   :  { %963 = vrot.lane.b32.xlu2 %v961_v0, %s1619_s19 }
 0xc7f   :  { %v902_v24 = vpop.permute.xlu1 %901 }
 0xc80   :  { %v904_v1 = vadd.f32 %v902_v24, %v848_v17 }
 0xc82   :  { %1578 = vtanh.f32 %v904_v1 }
 0xc88   :  { %v1579_v30 = vpop.eup %1578 }
 0xc89   :  { %908 = vrot.lane.b32.xlu0 %v1579_v30, %s1620_s0 }
 0xcc4   :  { %v964_v28 = vpop.permute.xlu2 %963 }
 0xcc5   :  { %v966_v29 = vadd.f32 %v964_v28, %v914_v61 }
 0xcc7   :  { %1580 = vtanh.f32 %v966_v29 }
 0xccd   :  { %v1581_v8 = vpop.eup %1580 }
 0xcce   :  { %970 = vrot.lane.b32.xlu1 %v1581_v8, %s1620_s0 }
 0xcfb   :  { %v909_v33 = vpop.permute.xlu0 %908 }
 0xcfc   :  { %v911_v11 = vmul.f32 %v909_v33, %v906_v31 }
 0xcfe   :  { %v2074_v50 = vadd.f32 %v912_v34, %v911_v11 }
 0xd00   :  { %1005 = vrot.lane.b32.xlu2 %v2074_v50, %s1620_s0 }
 0xd40   :  { %v971_v47 = vpop.permute.xlu1 %970 }
 0xd41   :  { %v973_v48 = vmul.f32 %v971_v47, %v968_v53 }
 0xd43   :  { %v977_v17 = vadd.f32 %v976_v54, %v973_v48 }
 0xd45   :  { %v979_v35 = vrot.slane %v977_v17, 2  ;;  %v1128_v13 = vrot.slane %v977_v17, 6 }
 0xd47   :  { %980 = vrot.lane.b32.xlu0 %v979_v35, %s1620_s0 }
 0xd5a   :  { %v1006_v36 = vpop.permute.xlu2 %1005 }
 0xd5b   :  { %1494 = vmatmul.msk.f32.vlgmr.msrb.gmra.mxu0 %vm93_vm0, %v1006_v36 }
 0xdb9   :  { %v981_v37 = vpop.permute.xlu0 %980 }
 0xdba   :  { %1493 = vmatmul.msk.f32.vlgmr.msrb.gmra.mxu3 %vm93_vm0, %v981_v37  ;;  %1496 = vmatmul.msk.f32.vlgmr.msrb.gmra.mxu1 %vm93_vm0, %v981_v37 }
 0xdd8   :  { %v1026_v49 = vpop.f32.mrf.mxu0 }
 0xdd9   :  { %v1027_v38 = vadd.f32 %v1892_v62, %v1026_v49 }
 0xddb   :  { %1050 = vrot.lane.b32.xlu1 %v1027_v38, %s1619_s19 }
 0xe37   :  { %v1086_v32 = vpop.f32.mrf.mxu1 }
 0xe38   :  { %v1087_v41 = vadd.f32 %v2088_v39, %v1086_v32 }
 0xe3a   :  { %v1090_v42 = vrot.slane %v1087_v41, 4 }
 0xe3c   :  { %v1092_v40 = vadd.f32 %v1090_v42, %v1068_v52  ;;  %1112 = vrot.lane.b32.xlu2 %v1090_v42, %s1619_s19 }
 0xe3d   :  { %v1001_v44 = vpop.f32.mrf.mxu3 }
 0xe3e   :  { %v1497_v62 = vmul.f32 -1.442695, %v1092_v40  ;;  %v1002_v45 = vadd.f32 %v1905_v5, %v1001_v44  ;;  %v2115_v40 = vld [vmem:[%s2206_s11] ss:$0 sm:$0xff] }
 0xe40   :  { %1582 = vpow2.f32 %v1497_v62  ;;  %v1029_v25 = vadd.f32 %v1027_v38, %v1002_v45 }
 0xe42   :  { %v1495_v55 = vmul.f32 -1.442695, %v1029_v25 }
 0xe44   :  { %1584 = vpow2.f32 %v1495_v55 }
 0xe46   :  { %v1583_v56 = vpop.eup %1582 }
 0xe47   :  { %v1096_v57 = vadd.f32 1.0, %v1583_v56  ;;  %v2124_v56 = vld [vmem:[%s2208_s10] ss:$0 sm:$0xff] }
 0xe49   :  { %1586 = vrcp.f32 %v1096_v57  ;;  %v1106_v2 = vand.u32 2147483647, %v1096_v57  ;;  %v1108_v9 = vand.u32 2147483648, %v1096_v57  ;;  %vm1102_vm2 = vweird.f32 %v1096_v57 }
 0xe4a   :  { %v1585_v14 = vpop.eup %1584 }
 0xe4b   :  { %v1033_v58 = vadd.f32 1.0, %v1585_v14  ;;  %vm1107_vm4 = vcmp.eq.f32.partialorder %v1106_v2, 8.507059e+37  ;;  %v1109_v16 = vor.u32 1.1754944e-38, %v1108_v9 }
 0xe4d   :  { %1588 = vrcp.f32 %v1033_v58  ;;  %v1045_v15 = vand.u32 2147483648, %v1033_v58  ;;  %v1043_v18 = vand.u32 2147483647, %v1033_v58  ;;  %vm1039_vm6 = vweird.f32 %v1033_v58  ;;  %v1051_v30 = vpop.permute.xlu1 %1050 }
 0xe4f   :  { %v1587_v59 = vpop.eup %1586  ;;  %v1046_v0 = vor.u32 1.1754944e-38, %v1045_v15  ;;  %vm1044_vm8 = vcmp.eq.f32.partialorder %v1043_v18, 8.507059e+37 }
 0xe50   :  { %v1098_v21 = vmul.f32 %v1587_v59, %v1096_v57  ;;  %vm1103_vm1 = vweird.f32 %v1587_v59 }
 0xe51   :  { %vm1104_vm3 = vmor %vm1102_vm2, %vm1103_vm1  ;;  %vm1389_vm2 = vcmask 1041408  }
 0xe52   :  { %v1099_v61 = vsub.f32 1.0, %v1098_v21 }
 0xe53   :  { %v1589_v63 = vpop.eup %1588 }
 0xe54   :  { %v1035_v10 = vmul.f32 %v1589_v63, %v1033_v58  ;;  %v1100_v12 = vmul.f32 %v1587_v59, %v1099_v61  ;;  %vm1040_vm5 = vweird.f32 %v1589_v63 }
 0xe55   :  { %vm1041_vm7 = vmor %vm1039_vm6, %vm1040_vm5 }
 0xe56   :  { %v1036_v5 = vsub.f32 1.0, %v1035_v10  ;;  %v1101_v6 = vadd.f32 %v1587_v59, %v1100_v12 }
 0xe58   :  { %v1037_v26 = vmul.f32 %v1589_v63, %v1036_v5  ;;  %v1105_v46 = vsel %vm1104_vm3, %v1587_v59, %v1101_v6  ;;  %vm1391_vm3 = vcmask 1043456  }
 0xe59   :  { %v1110_v7 = vsel %vm1107_vm4, %v1109_v16, %v1105_v46  ;;  %vm1393_vm4 = vcmask 1045504  }
 0xe5a   :  { %v1038_v20 = vadd.f32 %v1589_v63, %v1037_v26  ;;  %v1130_v27 = vmul.f32 %v1128_v13, %v1110_v7  ;;  %v1122_v36 = vsub.f32 1.0, %v1110_v7  ;;  %v1222_v26 = vadd.f32 %v608_v22, %v1900_v3 }
 0xe5c   :  { %v1042_v24 = vsel %vm1041_vm7, %v1589_v63, %v1038_v20 }
 0xe5d   :  { %v1047_v1 = vsel %vm1044_vm8, %v1046_v0, %v1042_v24 }
 0xe5e   :  { %v1053_v28 = vmul.f32 %v1051_v30, %v1047_v1  ;;  %v1060_v47 = vsub.f32 1.0, %v1047_v1  ;;  %v1066_v48 = vmul.f32 %v1047_v1, %v2074_v50 }
 0xe60   :  { %1055 = vrot.lane.b32.xlu0 %v1053_v28, %s1619_s19 }
 0xe96   :  { %v1113_v29 = vpop.permute.xlu2 %1112 }
 0xe97   :  { %v1115_v8 = vmul.f32 %v1113_v29, %v1110_v7 }
 0xe99   :  { %1117 = vrot.lane.b32.xlu1 %v1115_v8, %s1619_s19 }
 0xed2   :  { %v1056_v31 = vpop.permute.xlu0 %1055 }
 0xed3   :  { %v1058_v33 = vadd.f32 %v1056_v31, %v1002_v45 }
 0xed5   :  { %1590 = vtanh.f32 %v1058_v33 }
 0xedb   :  { %v1591_v34 = vpop.eup %1590 }
 0xedc   :  { %1062 = vrot.lane.b32.xlu2 %v1591_v34, %s1620_s0 }
 0xf0b   :  { %v1118_v11 = vpop.permute.xlu1 %1117 }
 0xf0c   :  { %v1120_v51 = vadd.f32 %v1118_v11, %v1068_v52 }
 0xf0e   :  { %1592 = vtanh.f32 %v1120_v51 }
 0xf14   :  { %v1593_v53 = vpop.eup %1592 }
 0xf15   :  { %1124 = vrot.lane.b32.xlu0 %v1593_v53, %s1620_s0 }
 0xf36   :  { %v1063_v54 = vpop.permute.xlu2 %1062 }
 0xf37   :  { %v1065_v17 = vmul.f32 %v1063_v54, %v1060_v47 }
 0xf39   :  { %v2101_v35 = vadd.f32 %v1066_v48, %v1065_v17 }
 0xf3b   :  { %1159 = vrot.lane.b32.xlu1 %v2101_v35, %s1620_s0 }
 0xf87   :  { %v1125_v37 = vpop.permute.xlu0 %1124 }
 0xf88   :  { %v1127_v49 = vmul.f32 %v1125_v37, %v1122_v36 }
 0xf8a   :  { %v2105_v38 = vadd.f32 %v1130_v27, %v1127_v49 }
 0xf8c   :  { %v1133_v32 = vrot.slane %v2105_v38, 4  ;;  %v1282_v49 = vrot.slane %v2105_v38, 6  ;;  %v1376_v38 = vrot.slane %v1955_v43, 6 }
 0xf8e   :  { %1134 = vrot.lane.b32.xlu2 %v1133_v32, %s1620_s0 }
 0xfad   :  { %v1160_v41 = vpop.permute.xlu1 %1159 }
 0xfae   :  { %1499 = vmatmul.msk.f32.vlgmr.msra.gmra.mxu3 %vm93_vm0, %v1160_v41 }
 0xfe8   :  { %v1135_v52 = vpop.permute.xlu2 %1134 }
 0xfe9   :  { %1498 = vmatmul.msk.f32.vlgmr.msrb.gmra.mxu2 %vm93_vm0, %v1135_v52  ;;  %1501 = vmatmul.msk.f32.vlgmr.msra.gmra.mxu0 %vm93_vm0, %v1135_v52 }
0x1031   :  { %v1180_v42 = vpop.f32.mrf.mxu3 }
0x1032   :  { %v1181_v44 = vadd.f32 %v2115_v40, %v1180_v42 }
0x1034   :  { %1204 = vrot.lane.b32.xlu0 %v1181_v44, %s1619_s19 }
0x1066   :  { %v1240_v62 = vpop.f32.mrf.mxu0 }
0x1067   :  { %v1241_v45 = vadd.f32 %v2088_v39, %v1240_v62 }
0x1069   :  { %v1244_v25 = vrot.slane %v1241_v45, 2 }
0x106b   :  { %1266 = vrot.lane.b32.xlu1 %v1244_v25, %s1619_s19  ;;  %v1246_v18 = vadd.f32 %v1244_v25, %v1222_v26 }
0x106c   :  { %v1155_v55 = vpop.f32.mrf.mxu2 }
0x106d   :  { %v1156_v57 = vadd.f32 %v2124_v56, %v1155_v55  ;;  %v1502_v46 = vmul.f32 -1.442695, %v1246_v18 }
0x106f   :  { %v1183_v14 = vadd.f32 %v1181_v44, %v1156_v57 }
0x1071   :  { %v1500_v58 = vmul.f32 -1.442695, %v1183_v14  ;;  %v1378_v14 = vrot.slane %v1990_v60, 4  ;;  %v1401_v60 = vld [vmem:[%s2209_s12 + $0x18] sm:$0xff] }
0x1072   :  { %1428 = vmatpush.msrb.mxu3 %v1401_v60 }
0x1073   :  { %1594 = vpow2.f32 %v1500_v58  ;;  %v1380_v58 = vrot.slane %v2028_v4, 2 }
0x1079   :  { %v1595_v59 = vpop.eup %1594 }
0x107a   :  { %v1187_v21 = vadd.f32 1.0, %v1595_v59  ;;  %v1390_v59 = vsel %vm1389_vm2, %v1919_v23, %v1376_v38  ;;  %v1400_v23 = vld [vmem:[%s2209_s12 + $0x10] sm:$0xff] }
0x107b   :  { %1429 = vmatpush.msrb.mxu3 %v1400_v23 }
0x107c   :  { %1596 = vrcp.f32 %v1187_v21  ;;  %v1199_v10 = vand.u32 2147483648, %v1187_v21  ;;  %vm1193_vm10 = vweird.f32 %v1187_v21  ;;  %v1197_v12 = vand.u32 2147483647, %v1187_v21 }
0x107d   :  { %1598 = vpow2.f32 %v1502_v46 }
0x107e   :  { %v1200_v6 = vor.u32 1.1754944e-38, %v1199_v10  ;;  %vm1198_vm12 = vcmp.eq.f32.partialorder %v1197_v12, 8.507059e+37 }
0x1082   :  { %v1597_v61 = vpop.eup %1596 }
0x1083   :  { %v1189_v63 = vmul.f32 %v1597_v61, %v1187_v21  ;;  %vm1194_vm9 = vweird.f32 %v1597_v61  ;;  %v1599_v7 = vpop.eup %1598  ;;  %v1392_v21 = vsel %vm1391_vm3, %v1390_v59, %v1378_v14 }
0x1084   :  { %vm1195_vm11 = vmor %vm1193_vm10, %vm1194_vm9  ;;  %v1250_v20 = vadd.f32 1.0, %v1599_v7  ;;  %vm1444_vm9 = vcmask 261126   ;;  %vm1449_vm10 = vcmask 254976  }
0x1085   :  { %v1190_v39 = vsub.f32 1.0, %v1189_v63 }
0x1086   :  { %1600 = vrcp.f32 %v1250_v20  ;;  %v1262_v28 = vand.u32 2147483648, %v1250_v20  ;;  %vm1256_vm14 = vweird.f32 %v1250_v20  ;;  %v1260_v29 = vand.u32 2147483647, %v1250_v20 }
0x1087   :  { %v1191_v2 = vmul.f32 %v1597_v61, %v1190_v39 }
0x1088   :  { %v1263_v31 = vor.u32 1.1754944e-38, %v1262_v28  ;;  %vm1261_vm1 = vcmp.eq.f32.partialorder %v1260_v29, 8.507059e+37 }
0x1089   :  { %v1192_v9 = vadd.f32 %v1597_v61, %v1191_v2  ;;  %v1399_v2 = vld [vmem:[%s2209_s12 + $0x8] sm:$0xff] }
0x108a   :  { %1430 = vmatpush.msrb.mxu3 %v1399_v2 }
0x108b   :  { %v1196_v5 = vsel %vm1195_vm11, %v1597_v61, %v1192_v9  ;;  %v1394_v61 = vsel %vm1393_vm4, %v1392_v21, %v1380_v58 }
0x108c   :  { %v1201_v15 = vsel %vm1198_vm12, %v1200_v6, %v1196_v5  ;;  %v1601_v27 = vpop.eup %1600 }
0x108d   :  { %v1252_v0 = vmul.f32 %v1601_v27, %v1250_v20  ;;  %vm1257_vm13 = vweird.f32 %v1601_v27  ;;  %v1214_v54 = vsub.f32 1.0, %v1201_v15  ;;  %v1220_v17 = vmul.f32 %v1201_v15, %v2101_v35 }
0x108e   :  { %vm1258_vm15 = vmor %vm1256_vm14, %vm1257_vm13 }
0x108f   :  { %v1253_v24 = vsub.f32 1.0, %v1252_v0 }
0x1091   :  { %v1254_v1 = vmul.f32 %v1601_v27, %v1253_v24 }
0x1093   :  { %v1255_v30 = vadd.f32 %v1601_v27, %v1254_v1 }
0x1095   :  { %v1259_v8 = vsel %vm1258_vm15, %v1601_v27, %v1255_v30  ;;  %v1515_v30 = vld [vmem:[%s2210_s13] ss:$0 sm:$0xff] }
0x1096   :  { %v1264_v19 = vsel %vm1261_vm1, %v1263_v31, %v1259_v8 }
0x1097   :  { %v1276_v32 = vsub.f32 1.0, %v1264_v19  ;;  %v1284_v52 = vmul.f32 %v1282_v49, %v1264_v19 }
0x10a6   :  { %v1205_v13 = vpop.permute.xlu0 %1204 }
0x10a7   :  { %v1207_v16 = vmul.f32 %v1205_v13, %v1201_v15 }
0x10a9   :  { %1209 = vrot.lane.b32.xlu2 %v1207_v16, %s1619_s19 }
0x10dd   :  { %v1267_v22 = vpop.permute.xlu1 %1266 }
0x10de   :  { %v1269_v3 = vmul.f32 %v1267_v22, %v1264_v19  ;;  %v1382_v19 = vrot.slane %v2101_v35, 6 }
0x10e0   :  { %1271 = vrot.lane.b32.xlu0 %v1269_v3, %s1619_s19 }
0x1103   :  { %v1210_v33 = vpop.permute.xlu2 %1209 }
0x1104   :  { %v1212_v34 = vadd.f32 %v1210_v33, %v1156_v57 }
0x1106   :  { %1602 = vtanh.f32 %v1212_v34 }
0x110c   :  { %v1603_v11 = vpop.eup %1602 }
0x110d   :  { %1216 = vrot.lane.b32.xlu1 %v1603_v11, %s1620_s0 }
0x1152   :  { %v1272_v51 = vpop.permute.xlu0 %1271 }
0x1153   :  { %v1274_v53 = vadd.f32 %v1272_v51, %v1222_v26  ;;  %v1395_v51 = vsel %vm1389_vm2, %v2074_v50, %v1382_v19 }
0x1155   :  { %1604 = vtanh.f32 %v1274_v53 }
0x115b   :  { %v1605_v47 = vpop.eup %1604 }
0x115c   :  { %1278 = vrot.lane.b32.xlu2 %v1605_v47, %s1620_s0 }
0x117f   :  { %v1217_v48 = vpop.permute.xlu1 %1216 }
0x1180   :  { %v1219_v36 = vmul.f32 %v1217_v48, %v1214_v54 }
0x1182   :  { %v2135_v37 = vadd.f32 %v1220_v17, %v1219_v36 }
0x1184   :  { %1313 = vrot.lane.b32.xlu0 %v2135_v37, %s1620_s0  ;;  %v1384_v33 = vrot.slane %v2135_v37, 4 }
0x1186   :  { %v1396_v53 = vsel %vm1391_vm3, %v1395_v51, %v1384_v33 }
0x11b6   :  { %v1279_v41 = vpop.permute.xlu2 %1278 }
0x11b7   :  { %v1281_v42 = vmul.f32 %v1279_v41, %v1276_v32 }
0x11b9   :  { %v1285_v44 = vadd.f32 %v1284_v52, %v1281_v42 }
0x11bb   :  { %v1287_v62 = vrot.slane %v1285_v44, 6 }
0x11bd   :  { %1288 = vrot.lane.b32.xlu1 %v1287_v62, %s1620_s0 }
0x11f6   :  { %v1314_v45 = vpop.permute.xlu0 %1313 }
0x11f7   :  { %1504 = vmatmul.msk.f32.vlgmr.msra.gmra.mxu2 %vm93_vm0, %v1314_v45 }
0x122f   :  { %v1289_v25 = vpop.permute.xlu1 %1288 }
0x1230   :  { %1503 = vmatmul.msk.f32.vlgmr.msra.gmra.mxu1 %vm93_vm0, %v1289_v25 }
0x127a   :  { %v1334_v55 = vpop.f32.mrf.mxu2 }
0x127b   :  { %v1335_v57 = vadd.f32 %v2115_v40, %v1334_v55 }
0x127d   :  { %1358 = vrot.lane.b32.xlu2 %v1335_v57, %s1619_s19 }
0x1285   :  { %1408 = vrot.lane.b32.xlu2 %v1394_v61, %s1620_s0 }
0x12ad   :  { %v1309_v40 = vpop.f32.mrf.mxu1 }
0x12ae   :  { %v1310_v63 = vadd.f32 %v2124_v56, %v1309_v40  ;;  %v1398_v56 = vld [vmem:[%s2209_s12] sm:$0xff] }
0x12af   :  { %1431 = vmatpush.msrb.mxu3 %v1398_v56 }
0x12b0   :  { %v1337_v43 = vadd.f32 %v1335_v57, %v1310_v63 }
0x12b2   :  { %v1505_v39 = vmul.f32 -1.442695, %v1337_v43 }
0x12b4   :  { %1606 = vpow2.f32 %v1505_v39 }
0x12ba   :  { %v1607_v4 = vpop.eup %1606 }
0x12bb   :  { %v1341_v9 = vadd.f32 1.0, %v1607_v4 }
0x12bd   :  { %1608 = vrcp.f32 %v1341_v9  ;;  %v1353_v15 = vand.u32 2147483648, %v1341_v9  ;;  %vm1347_vm6 = vweird.f32 %v1341_v9  ;;  %v1351_v16 = vand.u32 2147483647, %v1341_v9 }
0x12bf   :  { %v1354_v18 = vor.u32 1.1754944e-38, %v1353_v15  ;;  %vm1352_vm8 = vcmp.eq.f32.partialorder %v1351_v16, 8.507059e+37 }
0x12c3   :  { %v1609_v10 = vpop.eup %1608 }
0x12c4   :  { %v1343_v12 = vmul.f32 %v1609_v10, %v1341_v9  ;;  %vm1348_vm5 = vweird.f32 %v1609_v10 }
0x12c5   :  { %vm1349_vm7 = vmor %vm1347_vm6, %vm1348_vm5 }
0x12c6   :  { %v1344_v5 = vsub.f32 1.0, %v1343_v12 }
0x12c8   :  { %v1345_v6 = vmul.f32 %v1609_v10, %v1344_v5 }
0x12ca   :  { %v1346_v13 = vadd.f32 %v1609_v10, %v1345_v6 }
0x12cc   :  { %v1350_v26 = vsel %vm1349_vm7, %v1609_v10, %v1346_v13 }
0x12cd   :  { %v1355_v7 = vsel %vm1352_vm8, %v1354_v18, %v1350_v26 }
0x12ce   :  { %v1368_v8 = vsub.f32 1.0, %v1355_v7  ;;  %v1374_v22 = vmul.f32 %v1355_v7, %v2135_v37 }
0x12d7   :  { %v1359_v46 = vpop.permute.xlu2 %1358 }
0x12d8   :  { %v1361_v20 = vmul.f32 %v1359_v46, %v1355_v7 }
0x12da   :  { %1363 = vrot.lane.b32.xlu0 %v1361_v20, %s1619_s19 }
0x12df   :  { %v1409_v27 = vpop.permute.xlu2 %1408 }
0x12e0   :  { %1506 = vmatmul.msk.f32.vlgmr.msrb.gmra.mxu3 %vm93_vm0, %v1409_v27 }
0x134c   :  { %v1364_v0 = vpop.permute.xlu0 %1363 }
0x134d   :  { %v1366_v24 = vadd.f32 %v1364_v0, %v1310_v63 }
0x134f   :  { %1610 = vtanh.f32 %v1366_v24 }
0x1355   :  { %v1611_v1 = vpop.eup %1610 }
0x1356   :  { %1370 = vrot.lane.b32.xlu1 %v1611_v1, %s1620_s0 }
0x135e   :  { %1441 = vrot.lane.b32.xlu1 %v1285_v44, %s1620_s0 }
0x1363   :  { %v1433_v28 = vpop.f32.mrf.mxu3 }
0x1364   :  { %v1434_v29 = vadd.f32 %v1515_v30, %v1433_v28 }
0x1366   :  { %1439 = vst.msk [vmem:[%s2211_s14] sm:$0xff] %vm93_vm0, %v1434_v29 }
0x13c8   :  { %v1371_v31 = vpop.permute.xlu1 %1370 }
0x13c9   :  { %v1373_v3 = vmul.f32 %v1371_v31, %v1368_v8 }
0x13cb   :  { %v1375_v34 = vadd.f32 %v1374_v22, %v1373_v3 }
0x13cd   :  { %v1387_v11 = vrot.slane %v1375_v34, 2  ;;  %1446 = vrot.lane.b32.xlu2 %v1375_v34, %s1620_s0 }
0x13cf   :  { %v1397_v47 = vsel %vm1393_vm4, %v1396_v53, %v1387_v11 }
0x13d0   :  { %1410 = vrot.lane.b32.xlu0 %v1397_v47, %s1620_s0  ;;  %v1442_v35 = vpop.permute.xlu1 %1441 }
0x13d1   :  { %1445 = vst.msk [vmem:[%s2212_s15 - $0x6] sm:$0xc0] %vm1444_vm9, %v1442_v35 }
0x1427   :  { %v1447_v54 = vpop.permute.xlu2 %1446 }
0x1428   :  { %1450 = vst.msk [vmem:[%s2213_s16] sm:$0x3] %vm1449_vm10, %v1447_v54 }
0x1442   :  { %v1411_v48 = vpop.permute.xlu0 %1410 }
0x1443   :  { %1507 = vmatmul.msk.f32.gmra.mxu3 %vm93_vm0, %v1411_v48 }
0x14c6   :  { %v1436_v50 = vpop.f32.mrf.mxu3 }
0x14c7   :  { %v1437_v17 = vadd.f32 %v1515_v30, %v1436_v50 }
0x14c9   :  { %1440 = vst.msk [vmem:[%s2211_s14 + $0x8] sm:$0xff] %vm93_vm0, %v1437_v17 }

</bundles_post_ra>
